<compile_context>
chip_gen: v5e
topology: v5e:2x2
jax: 0.10.0
libtpu: 0.0.40
codegen_flags: <defaults>
</compile_context>

<pallas_src>
import functools

import jax
import jax.numpy as jnp
import numpy as np
from jax.experimental import pallas as pl
from jax.experimental.pallas import tpu as pltpu

HH = 64          # per-layer lane span inside a gate block (layer-0: 0..63, layer-1: 64..127)
HG = 2 * HH      # 128 = one gate block = one full 128-lane vreg group
G = 4 * HG       # 512 = [ i | f | g | o ] blocks, both layers interleaved in each


# ---------------------------------------------------------------------------
# Kernel
# ---------------------------------------------------------------------------
def lstm_model_kernel(
    x_ref,       # ((T+1)*Bp, Ip) bf16  time-major flattened input (+ one all-zero slab)
    wih_ref,     # (Ip, G)        bf16  layer-0 input projection, compact gate layout
    bias_ref,    # (1, G)         f32   b0 on layer-0 lanes, b1 on layer-1 lanes
    wrec_ref,    # (HG, G)        bf16  fused recurrent weight; rows = [h0 | h1]
    fcw1_ref,    # (HG, F1p)      bf16  fc1, rows aligned with the layer-1 lanes of hs
    fcb1_ref,    # (1, F1p)       f32
    fcw2_ref,    # (F1p, 1)       bf16
    fcb2_ref,    # (1, 1)         f32
    out_ref,     # (Bp, 1)        f32
    xproj_scr,   # ((T+1)*Bp, G)  f32   VMEM scratch
    *,
    seq_len: int,
    batch_pad: int,
):
    Tp1 = seq_len + 1
    Bp = batch_pad

    # ---- Hoisted input projection for ALL timesteps: one bf16 matmul with f32
    #      accumulation, biases (b0 / b1) folded in, fully off the serial chain.
    proj = (
        jnp.dot(x_ref[...], wih_ref[...], preferred_element_type=jnp.float32)
        + bias_ref[...]
    )
    xproj_scr[...] = proj

    # Zero the layer-1 half of the g-gate block in slab 0 (lanes [5*HH, 6*HH)):
    # with g = tanh(0) = 0 and c1 = 0, the first pipelined step yields exactly
    # h1 = c1 = 0 (the LSTM zero initial state), so one uniform loop covers the
    # pipeline fill.  NOTE: this assumes the PyTorch default zero initial state.
    lane = jax.lax.broadcasted_iota(jnp.int32, (Bp, G), 1)
    kill = (lane >= 5 * HH) & (lane < 6 * HH)
    xproj_scr[0:Bp, :] = jnp.where(kill, 0.0, xproj_scr[0:Bp, :])

    wrec = wrec_ref[...]  # hoist loop-invariant weight load
    # TODO(synk): hold wrec in MXU weight registers across the recurrence
    # (pltpu.matmul_push_rhs / matmul_acc_lhs / matmul_pop) once validated on HW.

    # ---- Software-pipelined 2-layer recurrence.
    # Carry hs = [h0 | h1], cs = [c0 | c1], each (Bp, 128) f32.
    # Step k: layer-0 gates for time k and layer-1 gates for time k-1 in ONE
    # (Bp,128) x (128,512) matmul; gate slices are whole aligned 128-lane blocks.
    def step(k, carry):
        hs, cs = carry
        row = pl.multiple_of(k * Bp, 8)          # Bp is a multiple of 8
        gates = (
            jnp.dot(hs.astype(jnp.bfloat16), wrec,
                    preferred_element_type=jnp.float32)
            + xproj_scr[pl.ds(row, Bp), :]
        )
        i = jax.nn.sigmoid(gates[:, 0 * HG:1 * HG])
        f = jax.nn.sigmoid(gates[:, 1 * HG:2 * HG])
        g = jnp.tanh(gates[:, 2 * HG:3 * HG])
        o = jax.nn.sigmoid(gates[:, 3 * HG:4 * HG])
        cs = f * cs + i * g                      # cell state kept f32
        hs = o * jnp.tanh(cs)
        return hs, cs

    zeros = jnp.zeros((Bp, HG), jnp.float32)
    unroll = Tp1 if Tp1 <= 16 else 8             # partial unroll for long T
    hs, _ = jax.lax.fori_loop(0, Tp1, step, (zeros, zeros), unroll=unroll)

    # After the last step hs = [h0 (garbage from the zero slab) | h1_{T-1}].
    # fcw1 rows 0..HH-1 are zero, so hs feeds the head directly (no extraction).
    z = (
        jnp.dot(hs.astype(jnp.bfloat16), fcw1_ref[...],
                preferred_element_type=jnp.float32)
        + fcb1_ref[...]
    )
    z = jnp.maximum(z, 0.0)
    # TODO(synk): training-mode dropout (p=0.2) not implemented (inference semantics).
    z = (
        jnp.dot(z.astype(jnp.bfloat16), fcw2_ref[...],
                preferred_element_type=jnp.float32)
        + fcb2_ref[...]
    )
    out_ref[...] = jax.nn.sigmoid(z)


# ---------------------------------------------------------------------------
# Host-side weight packing (pure layout; all padding is zeros, so padded lanes
# provably stay zero or never contribute).
# ---------------------------------------------------------------------------
def pack_params(p, *, H, I, Ip, F1p=128):
    """Compact, vreg-aligned kernel layout.

    Each 128-lane gate block holds layer-0 in lanes [0, H) and layer-1 in lanes
    [HH, HH+H).  Gate blocks ordered [i | f | g | o] (PyTorch order).  wrec rows
    [0, H) multiply h0, rows [HH, HH+H) multiply h1.
    """
    assert H <= HH, "compact packing requires hidden_size <= 64"
    f32 = lambda a: np.asarray(a, np.float32)
    wih0, whh0, b0 = f32(p["wih0"]), f32(p["whh0"]), f32(p["b0"])
    wih1, whh1, b1 = f32(p["wih1"]), f32(p["whh1"]), f32(p["b1"])
    fcw1, fcb1 = f32(p["fcw1"]), f32(p["fcb1"])
    fcw2, fcb2 = f32(p["fcw2"]), f32(p["fcb2"])
    F1 = fcw1.shape[1]
    assert F1 <= F1p and I <= Ip

    wih_big = np.zeros((Ip, G), np.float32)
    bias_big = np.zeros((1, G), np.float32)
    wrec = np.zeros((HG, G), np.float32)
    for k in range(4):  # PyTorch gate order: i, f, g, o
        src = slice(k * H, (k + 1) * H)
        c0 = slice(k * HG, k * HG + H)            # layer-0 lanes of gate-k block
        c1 = slice(k * HG + HH, k * HG + HH + H)  # layer-1 lanes of gate-k block
        wih_big[:I, c0] = wih0[:, src]
        bias_big[0, c0] = b0[0, src]
        bias_big[0, c1] = b1[0, src]
        wrec[:H, c0] = whh0[:, src]               # h0 -> layer-0 recurrence
        wrec[:H, c1] = wih1[:, src]               # h0 -> layer-1 "input"
        wrec[HH:HH + H, c1] = whh1[:, src]        # h1 -> layer-1 recurrence

    fcw1_big = np.zeros((HG, F1p), np.float32)
    fcw1_big[HH:HH + H, :F1] = fcw1               # aligned to the h1 lanes of hs
    fcb1_big = np.zeros((1, F1p), np.float32)
    fcb1_big[0, :F1] = fcb1[0]
    fcw2_big = np.zeros((F1p, 1), np.float32)
    fcw2_big[:F1, :] = fcw2

    return dict(
        wih=jnp.asarray(wih_big, jnp.bfloat16),   # one-time projection (f32 accumulate)
        bias=jnp.asarray(bias_big, jnp.float32),
        wrec=jnp.asarray(wrec, jnp.bfloat16),     # critical-path weight: bf16
        fcw1=jnp.asarray(fcw1_big, jnp.bfloat16),
        fcb1=jnp.asarray(fcb1_big, jnp.float32),
        fcw2=jnp.asarray(fcw2_big, jnp.bfloat16),
        fcb2=jnp.asarray(fcb2, jnp.float32),
    )


# ---------------------------------------------------------------------------
# Wrapper
# ---------------------------------------------------------------------------
def lstm_model_forward(x, params):
    B, T, I = x.shape
    H = params["whh0"].shape[0]
    Ip = ((I + 7) // 8) * 8                  # tiny K pad; no 128-lane blow-up
    Bp = max(8, ((B + 7) // 8) * 8)          # batch padded to the 8-sublane tile
    assert H <= HH

    packed = pack_params(params, H=H, I=I, Ip=Ip)

    # batch_first (B,T,I) -> time-major (T+1, Bp, Ip) -> flat 2-D ((T+1)*Bp, Ip).
    # The extra all-zero trailing timestep feeds the discarded layer-0 half of
    # the last pipelined step.  All reshapes stay on the host (free for Mosaic).
    xt = jnp.transpose(x.astype(jnp.float32), (1, 0, 2))
    xt = jnp.pad(xt, ((0, 1), (0, Bp - B), (0, Ip - I)))
    x2d = xt.reshape((T + 1) * Bp, Ip).astype(jnp.bfloat16)

    # VMEM scratch footprint = (T+1)*Bp*G*4 bytes (~144 KiB here).  For long
    # sequences / big batches chunk over a time grid axis instead of keeping
    # every slab resident (v7x has only 64 MiB physical VMEM).
    vmem = functools.partial(pl.BlockSpec, memory_space=pltpu.MemorySpace.VMEM)
    args = (x2d, packed["wih"], packed["bias"], packed["wrec"],
            packed["fcw1"], packed["fcb1"], packed["fcw2"], packed["fcb2"])

    out = pl.pallas_call(
        functools.partial(lstm_model_kernel, seq_len=T, batch_pad=Bp),
        out_shape=jax.ShapeDtypeStruct((Bp, 1), jnp.float32),
        in_specs=[vmem() for _ in args],
        out_specs=vmem(),
        scratch_shapes=[pltpu.VMEM(((T + 1) * Bp, G), jnp.float32)],
    )(*args)
    return out[:B]


# ---------------------------------------------------------------------------
# Init (PyTorch-default-style, natural layout) and pure-JAX reference
# ---------------------------------------------------------------------------
def init_params(key, input_size=6, hidden_size=64):
    H = hidden_size
    keys = jax.random.split(key, 12)
    k = 1.0 / np.sqrt(H)

    def u(kk, shape, bound):
        return jax.random.uniform(kk, shape, jnp.float32, -bound, bound)

    wih0 = u(keys[0], (input_size, 4 * H), k)
    whh0 = u(keys[1], (H, 4 * H), k)
    b0 = u(keys[2], (1, 4 * H), k) + u(keys[3], (1, 4 * H), k)
    wih1 = u(keys[4], (H, 4 * H), k)
    whh1 = u(keys[5], (H, 4 * H), k)
    b1 = u(keys[6], (1, 4 * H), k) + u(keys[7], (1, 4 * H), k)
    k1 = 1.0 / np.sqrt(H)
    k2 = 1.0 / np.sqrt(32)
    fcw1 = u(keys[8], (H, 32), k1)
    fcb1 = u(keys[9], (1, 32), k1)
    fcw2 = u(keys[10], (32, 1), k2)
    fcb2 = u(keys[11], (1, 1), k2)
    return dict(wih0=wih0, whh0=whh0, b0=b0, wih1=wih1, whh1=whh1, b1=b1,
                fcw1=fcw1, fcb1=fcb1, fcw2=fcw2, fcb2=fcb2)


def reference_forward(x, p):
    """Pure-JAX f32 reference (natural layout) for validation."""
    H = p["whh0"].shape[0]
    B, T, _ = x.shape

    def cell(x_t, h, c, wih, whh, b):
        g = x_t @ wih + h @ whh + b
        i = jax.nn.sigmoid(g[:, :H])
        f = jax.nn.sigmoid(g[:, H:2 * H])
        gg = jnp.tanh(g[:, 2 * H:3 * H])
        o = jax.nn.sigmoid(g[:, 3 * H:])
        c = f * c + i * gg
        return o * jnp.tanh(c), c

    h0 = c0 = h1 = c1 = jnp.zeros((B, H), jnp.float32)
    for t in range(T):
        h0, c0 = cell(x[:, t, :], h0, c0, p["wih0"], p["whh0"], p["b0"])
        h1, c1 = cell(h0, h1, c1, p["wih1"], p["whh1"], p["b1"])
    z = jnp.maximum(h1 @ p["fcw1"] + p["fcb1"], 0.0)
    return jax.nn.sigmoid(z @ p["fcw2"] + p["fcb2"])


if __name__ == "__main__":
    key = jax.random.PRNGKey(0)
    k_param, k_x = jax.random.split(key)

    batch, seq, input_size, hidden = 2, 8, 6, 64
    params = init_params(k_param, input_size=input_size, hidden_size=hidden)
    x = jax.random.normal(k_x, (batch, seq, input_size), jnp.float32)

    out = jax.block_until_ready(lstm_model_forward(x, params))
    ref = jax.block_until_ready(reference_forward(x, params))

    assert out.shape == (batch, 1)
    # Tolerance relaxed vs a pure-f32 implementation because matmul operands /
    # weights are bf16 in the kernel (f32 accumulation, f32 h/c state).
    # Validated at T=8; bf16 drift grows slowly with much longer sequences.
    np.testing.assert_allclose(np.asarray(out), np.asarray(ref), rtol=2e-2, atol=2e-2)

    print("KERNEL_OK")
</pallas_src>

<mosaic_0001>
module attributes {stable_mosaic.version = 11 : i64} {
  func.func @lstm_model_kernel(%arg0: memref<72x8xbf16, #tpu.memory_space<vmem>>, %arg1: memref<8x512xbf16, #tpu.memory_space<vmem>>, %arg2: memref<1x512xf32, #tpu.memory_space<vmem>>, %arg3: memref<128x512xbf16, #tpu.memory_space<vmem>>, %arg4: memref<128x128xbf16, #tpu.memory_space<vmem>>, %arg5: memref<1x128xf32, #tpu.memory_space<vmem>>, %arg6: memref<128x1xbf16, #tpu.memory_space<vmem>>, %arg7: memref<1x1xf32, #tpu.memory_space<vmem>>, %arg8: memref<8x1xf32, #tpu.memory_space<vmem>>, %arg9: memref<72x512xf32, #tpu.memory_space<vmem>>) attributes {dimension_semantics = [], scalar_prefetch = 0 : i64, scratch_operands = 1 : i64, tpu.core_type = #tpu.core_type<tc>} {
    %c0 = arith.constant 0 : index
    %c0_0 = arith.constant 0 : index
    %0 = vector.load %arg0[%c0, %c0_0] : memref<72x8xbf16, #tpu.memory_space<vmem>>, vector<72x8xbf16>
    %c0_1 = arith.constant 0 : index
    %c0_2 = arith.constant 0 : index
    %1 = vector.load %arg1[%c0_1, %c0_2] : memref<8x512xbf16, #tpu.memory_space<vmem>>, vector<8x512xbf16>
    %cst = arith.constant dense<0.000000e+00> : vector<72x512xf32>
    %2 = tpu.matmul %0, %1, %cst {dimension_numbers = #tpu.dot_dimension_numbers<[1], [0], [0], [1], [0, 0, 1, 1], [], []>} : vector<72x8xbf16>, vector<8x512xbf16>, vector<72x512xf32> -> vector<72x512xf32>
    %c0_3 = arith.constant 0 : index
    %c0_4 = arith.constant 0 : index
    %3 = vector.load %arg2[%c0_3, %c0_4] : memref<1x512xf32, #tpu.memory_space<vmem>>, vector<1x512xf32>
    %4 = vector.broadcast %3 : vector<1x512xf32> to vector<72x512xf32>
    %5 = arith.addf %2, %4 : vector<72x512xf32>
    %c0_5 = arith.constant 0 : index
    %c0_6 = arith.constant 0 : index
    %6 = vector.load %arg9[%c0_5, %c0_6] : memref<72x512xf32, #tpu.memory_space<vmem>>, vector<72x512xf32>
    tpu.vector_store %arg9[%c0_5, %c0_6], %5 {strides = array<i32>} : memref<72x512xf32, #tpu.memory_space<vmem>>, vector<72x512xf32>,
    %7 = tpu.iota {dimensions = array<i32: 1>} : vector<8x512xi32>
    %c320_i32 = arith.constant 320 : i32
    %8 = vector.broadcast %c320_i32 : i32 to vector<8x512xi32>
    %9 = arith.cmpi sge, %7, %8 : vector<8x512xi32>
    %c384_i32 = arith.constant 384 : i32
    %10 = vector.broadcast %c384_i32 : i32 to vector<8x512xi32>
    %11 = arith.cmpi slt, %7, %10 : vector<8x512xi32>
    %12 = arith.andi %9, %11 : vector<8x512xi1>
    %c0_7 = arith.constant 0 : index
    %c0_8 = arith.constant 0 : index
    %13 = vector.load %arg9[%c0_7, %c0_8] : memref<72x512xf32, #tpu.memory_space<vmem>>, vector<8x512xf32>
    %cst_9 = arith.constant 0.000000e+00 : f32
    %14 = vector.broadcast %cst_9 : f32 to vector<8x512xf32>
    %15 = arith.select %12, %14, %13 : vector<8x512xi1>, vector<8x512xf32>
    %c0_10 = arith.constant 0 : index
    %c0_11 = arith.constant 0 : index
    %16 = vector.load %arg9[%c0_10, %c0_11] : memref<72x512xf32, #tpu.memory_space<vmem>>, vector<8x512xf32>
    tpu.vector_store %arg9[%c0_10, %c0_11], %15 {strides = array<i32>} : memref<72x512xf32, #tpu.memory_space<vmem>>, vector<8x512xf32>,
    %c0_12 = arith.constant 0 : index
    %c0_13 = arith.constant 0 : index
    %17 = vector.load %arg3[%c0_12, %c0_13] : memref<128x512xbf16, #tpu.memory_space<vmem>>, vector<128x512xbf16>
    %cst_14 = arith.constant 0.000000e+00 : f32
    %18 = vector.broadcast %cst_14 : f32 to vector<8x128xf32>
    %c0_i32 = arith.constant 0 : i32
    %c8_i32 = arith.constant 8 : i32
    %19 = arith.muli %c0_i32, %c8_i32 : i32
    %20 = tpu.assume_multiple %19, 8 : i32
    %21 = arith.truncf %18 : vector<8x128xf32> to vector<8x128xbf16>
    %cst_15 = arith.constant dense<0.000000e+00> : vector<8x512xf32>
    %22 = tpu.matmul %21, %17, %cst_15 {dimension_numbers = #tpu.dot_dimension_numbers<[1], [0], [0], [1], [0, 0, 1, 1], [], []>} : vector<8x128xbf16>, vector<128x512xbf16>, vector<8x512xf32> -> vector<8x512xf32>
    %23 = arith.index_cast %20 : i32 to index
    %c0_16 = arith.constant 0 : index
    %24 = vector.load %arg9[%23, %c0_16] : memref<72x512xf32, #tpu.memory_space<vmem>>, vector<8x512xf32>
    %25 = arith.addf %22, %24 : vector<8x512xf32>
    %26 = vector.extract_strided_slice %25 {offsets = [0, 0], sizes = [8, 128], strides = [1, 1]} : vector<8x512xf32> to vector<8x128xf32>
    %27 = arith.negf %26 : vector<8x128xf32>
    %28 = math.exp %27 : vector<8x128xf32>
    %cst_17 = arith.constant 1.000000e+00 : f32
    %29 = vector.broadcast %cst_17 : f32 to vector<8x128xf32>
    %30 = arith.addf %29, %28 : vector<8x128xf32>
    %31 = arith.divf %29, %30 : vector<8x128xf32>
    %32 = vector.extract_strided_slice %25 {offsets = [0, 128], sizes = [8, 128], strides = [1, 1]} : vector<8x512xf32> to vector<8x128xf32>
    %33 = arith.negf %32 : vector<8x128xf32>
    %34 = math.exp %33 : vector<8x128xf32>
    %cst_18 = arith.constant 1.000000e+00 : f32
    %35 = vector.broadcast %cst_18 : f32 to vector<8x128xf32>
    %36 = arith.addf %35, %34 : vector<8x128xf32>
    %37 = arith.divf %35, %36 : vector<8x128xf32>
    %38 = vector.extract_strided_slice %25 {offsets = [0, 256], sizes = [8, 128], strides = [1, 1]} : vector<8x512xf32> to vector<8x128xf32>
    %39 = math.tanh %38 : vector<8x128xf32>
    %40 = vector.extract_strided_slice %25 {offsets = [0, 384], sizes = [8, 128], strides = [1, 1]} : vector<8x512xf32> to vector<8x128xf32>
    %41 = arith.negf %40 : vector<8x128xf32>
    %42 = math.exp %41 : vector<8x128xf32>
    %cst_19 = arith.constant 1.000000e+00 : f32
    %43 = vector.broadcast %cst_19 : f32 to vector<8x128xf32>
    %44 = arith.addf %43, %42 : vector<8x128xf32>
    %45 = arith.divf %43, %44 : vector<8x128xf32>
    %46 = arith.mulf %37, %18 : vector<8x128xf32>
    %47 = arith.mulf %31, %39 : vector<8x128xf32>
    %48 = arith.addf %46, %47 : vector<8x128xf32>
    %49 = math.tanh %48 : vector<8x128xf32>
    %50 = arith.mulf %45, %49 : vector<8x128xf32>
    %c1_i32 = arith.constant 1 : i32
    %c8_i32_20 = arith.constant 8 : i32
    %51 = arith.muli %c1_i32, %c8_i32_20 : i32
    %52 = tpu.assume_multiple %51, 8 : i32
    %53 = arith.truncf %50 : vector<8x128xf32> to vector<8x128xbf16>
    %cst_21 = arith.constant dense<0.000000e+00> : vector<8x512xf32>
    %54 = tpu.matmul %53, %17, %cst_21 {dimension_numbers = #tpu.dot_dimension_numbers<[1], [0], [0], [1], [0, 0, 1, 1], [], []>} : vector<8x128xbf16>, vector<128x512xbf16>, vector<8x512xf32> -> vector<8x512xf32>
    %55 = arith.index_cast %52 : i32 to index
    %c0_22 = arith.constant 0 : index
    %56 = vector.load %arg9[%55, %c0_22] : memref<72x512xf32, #tpu.memory_space<vmem>>, vector<8x512xf32>
    %57 = arith.addf %54, %56 : vector<8x512xf32>
    %58 = vector.extract_strided_slice %57 {offsets = [0, 0], sizes = [8, 128], strides = [1, 1]} : vector<8x512xf32> to vector<8x128xf32>
    %59 = arith.negf %58 : vector<8x128xf32>
    %60 = math.exp %59 : vector<8x128xf32>
    %cst_23 = arith.constant 1.000000e+00 : f32
    %61 = vector.broadcast %cst_23 : f32 to vector<8x128xf32>
    %62 = arith.addf %61, %60 : vector<8x128xf32>
    %63 = arith.divf %61, %62 : vector<8x128xf32>
    %64 = vector.extract_strided_slice %57 {offsets = [0, 128], sizes = [8, 128], strides = [1, 1]} : vector<8x512xf32> to vector<8x128xf32>
    %65 = arith.negf %64 : vector<8x128xf32>
    %66 = math.exp %65 : vector<8x128xf32>
    %cst_24 = arith.constant 1.000000e+00 : f32
    %67 = vector.broadcast %cst_24 : f32 to vector<8x128xf32>
    %68 = arith.addf %67, %66 : vector<8x128xf32>
    %69 = arith.divf %67, %68 : vector<8x128xf32>
    %70 = vector.extract_strided_slice %57 {offsets = [0, 256], sizes = [8, 128], strides = [1, 1]} : vector<8x512xf32> to vector<8x128xf32>
    %71 = math.tanh %70 : vector<8x128xf32>
    %72 = vector.extract_strided_slice %57 {offsets = [0, 384], sizes = [8, 128], strides = [1, 1]} : vector<8x512xf32> to vector<8x128xf32>
    %73 = arith.negf %72 : vector<8x128xf32>
    %74 = math.exp %73 : vector<8x128xf32>
    %cst_25 = arith.constant 1.000000e+00 : f32
    %75 = vector.broadcast %cst_25 : f32 to vector<8x128xf32>
    %76 = arith.addf %75, %74 : vector<8x128xf32>
    %77 = arith.divf %75, %76 : vector<8x128xf32>
    %78 = arith.mulf %69, %48 : vector<8x128xf32>
    %79 = arith.mulf %63, %71 : vector<8x128xf32>
    %80 = arith.addf %78, %79 : vector<8x128xf32>
    %81 = math.tanh %80 : vector<8x128xf32>
    %82 = arith.mulf %77, %81 : vector<8x128xf32>
    %c2_i32 = arith.constant 2 : i32
    %c8_i32_26 = arith.constant 8 : i32
    %83 = arith.muli %c2_i32, %c8_i32_26 : i32
    %84 = tpu.assume_multiple %83, 8 : i32
    %85 = arith.truncf %82 : vector<8x128xf32> to vector<8x128xbf16>
    %cst_27 = arith.constant dense<0.000000e+00> : vector<8x512xf32>
    %86 = tpu.matmul %85, %17, %cst_27 {dimension_numbers = #tpu.dot_dimension_numbers<[1], [0], [0], [1], [0, 0, 1, 1], [], []>} : vector<8x128xbf16>, vector<128x512xbf16>, vector<8x512xf32> -> vector<8x512xf32>
    %87 = arith.index_cast %84 : i32 to index
    %c0_28 = arith.constant 0 : index
    %88 = vector.load %arg9[%87, %c0_28] : memref<72x512xf32, #tpu.memory_space<vmem>>, vector<8x512xf32>
    %89 = arith.addf %86, %88 : vector<8x512xf32>
    %90 = vector.extract_strided_slice %89 {offsets = [0, 0], sizes = [8, 128], strides = [1, 1]} : vector<8x512xf32> to vector<8x128xf32>
    %91 = arith.negf %90 : vector<8x128xf32>
    %92 = math.exp %91 : vector<8x128xf32>
    %cst_29 = arith.constant 1.000000e+00 : f32
    %93 = vector.broadcast %cst_29 : f32 to vector<8x128xf32>
    %94 = arith.addf %93, %92 : vector<8x128xf32>
    %95 = arith.divf %93, %94 : vector<8x128xf32>
    %96 = vector.extract_strided_slice %89 {offsets = [0, 128], sizes = [8, 128], strides = [1, 1]} : vector<8x512xf32> to vector<8x128xf32>
    %97 = arith.negf %96 : vector<8x128xf32>
    %98 = math.exp %97 : vector<8x128xf32>
    %cst_30 = arith.constant 1.000000e+00 : f32
    %99 = vector.broadcast %cst_30 : f32 to vector<8x128xf32>
    %100 = arith.addf %99, %98 : vector<8x128xf32>
    %101 = arith.divf %99, %100 : vector<8x128xf32>
    %102 = vector.extract_strided_slice %89 {offsets = [0, 256], sizes = [8, 128], strides = [1, 1]} : vector<8x512xf32> to vector<8x128xf32>
    %103 = math.tanh %102 : vector<8x128xf32>
    %104 = vector.extract_strided_slice %89 {offsets = [0, 384], sizes = [8, 128], strides = [1, 1]} : vector<8x512xf32> to vector<8x128xf32>
    %105 = arith.negf %104 : vector<8x128xf32>
    %106 = math.exp %105 : vector<8x128xf32>
    %cst_31 = arith.constant 1.000000e+00 : f32
    %107 = vector.broadcast %cst_31 : f32 to vector<8x128xf32>
    %108 = arith.addf %107, %106 : vector<8x128xf32>
    %109 = arith.divf %107, %108 : vector<8x128xf32>
    %110 = arith.mulf %101, %80 : vector<8x128xf32>
    %111 = arith.mulf %95, %103 : vector<8x128xf32>
    %112 = arith.addf %110, %111 : vector<8x128xf32>
    %113 = math.tanh %112 : vector<8x128xf32>
    %114 = arith.mulf %109, %113 : vector<8x128xf32>
    %c3_i32 = arith.constant 3 : i32
    %c8_i32_32 = arith.constant 8 : i32
    %115 = arith.muli %c3_i32, %c8_i32_32 : i32
    %116 = tpu.assume_multiple %115, 8 : i32
    %117 = arith.truncf %114 : vector<8x128xf32> to vector<8x128xbf16>
    %cst_33 = arith.constant dense<0.000000e+00> : vector<8x512xf32>
    %118 = tpu.matmul %117, %17, %cst_33 {dimension_numbers = #tpu.dot_dimension_numbers<[1], [0], [0], [1], [0, 0, 1, 1], [], []>} : vector<8x128xbf16>, vector<128x512xbf16>, vector<8x512xf32> -> vector<8x512xf32>
    %119 = arith.index_cast %116 : i32 to index
    %c0_34 = arith.constant 0 : index
    %120 = vector.load %arg9[%119, %c0_34] : memref<72x512xf32, #tpu.memory_space<vmem>>, vector<8x512xf32>
    %121 = arith.addf %118, %120 : vector<8x512xf32>
    %122 = vector.extract_strided_slice %121 {offsets = [0, 0], sizes = [8, 128], strides = [1, 1]} : vector<8x512xf32> to vector<8x128xf32>
    %123 = arith.negf %122 : vector<8x128xf32>
    %124 = math.exp %123 : vector<8x128xf32>
    %cst_35 = arith.constant 1.000000e+00 : f32
    %125 = vector.broadcast %cst_35 : f32 to vector<8x128xf32>
    %126 = arith.addf %125, %124 : vector<8x128xf32>
    %127 = arith.divf %125, %126 : vector<8x128xf32>
    %128 = vector.extract_strided_slice %121 {offsets = [0, 128], sizes = [8, 128], strides = [1, 1]} : vector<8x512xf32> to vector<8x128xf32>
    %129 = arith.negf %128 : vector<8x128xf32>
    %130 = math.exp %129 : vector<8x128xf32>
    %cst_36 = arith.constant 1.000000e+00 : f32
    %131 = vector.broadcast %cst_36 : f32 to vector<8x128xf32>
    %132 = arith.addf %131, %130 : vector<8x128xf32>
    %133 = arith.divf %131, %132 : vector<8x128xf32>
    %134 = vector.extract_strided_slice %121 {offsets = [0, 256], sizes = [8, 128], strides = [1, 1]} : vector<8x512xf32> to vector<8x128xf32>
    %135 = math.tanh %134 : vector<8x128xf32>
    %136 = vector.extract_strided_slice %121 {offsets = [0, 384], sizes = [8, 128], strides = [1, 1]} : vector<8x512xf32> to vector<8x128xf32>
    %137 = arith.negf %136 : vector<8x128xf32>
    %138 = math.exp %137 : vector<8x128xf32>
    %cst_37 = arith.constant 1.000000e+00 : f32
    %139 = vector.broadcast %cst_37 : f32 to vector<8x128xf32>
    %140 = arith.addf %139, %138 : vector<8x128xf32>
    %141 = arith.divf %139, %140 : vector<8x128xf32>
    %142 = arith.mulf %133, %112 : vector<8x128xf32>
    %143 = arith.mulf %127, %135 : vector<8x128xf32>
    %144 = arith.addf %142, %143 : vector<8x128xf32>
    %145 = math.tanh %144 : vector<8x128xf32>
    %146 = arith.mulf %141, %145 : vector<8x128xf32>
    %c4_i32 = arith.constant 4 : i32
    %c8_i32_38 = arith.constant 8 : i32
    %147 = arith.muli %c4_i32, %c8_i32_38 : i32
    %148 = tpu.assume_multiple %147, 8 : i32
    %149 = arith.truncf %146 : vector<8x128xf32> to vector<8x128xbf16>
    %cst_39 = arith.constant dense<0.000000e+00> : vector<8x512xf32>
    %150 = tpu.matmul %149, %17, %cst_39 {dimension_numbers = #tpu.dot_dimension_numbers<[1], [0], [0], [1], [0, 0, 1, 1], [], []>} : vector<8x128xbf16>, vector<128x512xbf16>, vector<8x512xf32> -> vector<8x512xf32>
    %151 = arith.index_cast %148 : i32 to index
    %c0_40 = arith.constant 0 : index
    %152 = vector.load %arg9[%151, %c0_40] : memref<72x512xf32, #tpu.memory_space<vmem>>, vector<8x512xf32>
    %153 = arith.addf %150, %152 : vector<8x512xf32>
    %154 = vector.extract_strided_slice %153 {offsets = [0, 0], sizes = [8, 128], strides = [1, 1]} : vector<8x512xf32> to vector<8x128xf32>
    %155 = arith.negf %154 : vector<8x128xf32>
    %156 = math.exp %155 : vector<8x128xf32>
    %cst_41 = arith.constant 1.000000e+00 : f32
    %157 = vector.broadcast %cst_41 : f32 to vector<8x128xf32>
    %158 = arith.addf %157, %156 : vector<8x128xf32>
    %159 = arith.divf %157, %158 : vector<8x128xf32>
    %160 = vector.extract_strided_slice %153 {offsets = [0, 128], sizes = [8, 128], strides = [1, 1]} : vector<8x512xf32> to vector<8x128xf32>
    %161 = arith.negf %160 : vector<8x128xf32>
    %162 = math.exp %161 : vector<8x128xf32>
    %cst_42 = arith.constant 1.000000e+00 : f32
    %163 = vector.broadcast %cst_42 : f32 to vector<8x128xf32>
    %164 = arith.addf %163, %162 : vector<8x128xf32>
    %165 = arith.divf %163, %164 : vector<8x128xf32>
    %166 = vector.extract_strided_slice %153 {offsets = [0, 256], sizes = [8, 128], strides = [1, 1]} : vector<8x512xf32> to vector<8x128xf32>
    %167 = math.tanh %166 : vector<8x128xf32>
    %168 = vector.extract_strided_slice %153 {offsets = [0, 384], sizes = [8, 128], strides = [1, 1]} : vector<8x512xf32> to vector<8x128xf32>
    %169 = arith.negf %168 : vector<8x128xf32>
    %170 = math.exp %169 : vector<8x128xf32>
    %cst_43 = arith.constant 1.000000e+00 : f32
    %171 = vector.broadcast %cst_43 : f32 to vector<8x128xf32>
    %172 = arith.addf %171, %170 : vector<8x128xf32>
    %173 = arith.divf %171, %172 : vector<8x128xf32>
    %174 = arith.mulf %165, %144 : vector<8x128xf32>
    %175 = arith.mulf %159, %167 : vector<8x128xf32>
    %176 = arith.addf %174, %175 : vector<8x128xf32>
    %177 = math.tanh %176 : vector<8x128xf32>
    %178 = arith.mulf %173, %177 : vector<8x128xf32>
    %c5_i32 = arith.constant 5 : i32
    %c8_i32_44 = arith.constant 8 : i32
    %179 = arith.muli %c5_i32, %c8_i32_44 : i32
    %180 = tpu.assume_multiple %179, 8 : i32
    %181 = arith.truncf %178 : vector<8x128xf32> to vector<8x128xbf16>
    %cst_45 = arith.constant dense<0.000000e+00> : vector<8x512xf32>
    %182 = tpu.matmul %181, %17, %cst_45 {dimension_numbers = #tpu.dot_dimension_numbers<[1], [0], [0], [1], [0, 0, 1, 1], [], []>} : vector<8x128xbf16>, vector<128x512xbf16>, vector<8x512xf32> -> vector<8x512xf32>
    %183 = arith.index_cast %180 : i32 to index
    %c0_46 = arith.constant 0 : index
    %184 = vector.load %arg9[%183, %c0_46] : memref<72x512xf32, #tpu.memory_space<vmem>>, vector<8x512xf32>
    %185 = arith.addf %182, %184 : vector<8x512xf32>
    %186 = vector.extract_strided_slice %185 {offsets = [0, 0], sizes = [8, 128], strides = [1, 1]} : vector<8x512xf32> to vector<8x128xf32>
    %187 = arith.negf %186 : vector<8x128xf32>
    %188 = math.exp %187 : vector<8x128xf32>
    %cst_47 = arith.constant 1.000000e+00 : f32
    %189 = vector.broadcast %cst_47 : f32 to vector<8x128xf32>
    %190 = arith.addf %189, %188 : vector<8x128xf32>
    %191 = arith.divf %189, %190 : vector<8x128xf32>
    %192 = vector.extract_strided_slice %185 {offsets = [0, 128], sizes = [8, 128], strides = [1, 1]} : vector<8x512xf32> to vector<8x128xf32>
    %193 = arith.negf %192 : vector<8x128xf32>
    %194 = math.exp %193 : vector<8x128xf32>
    %cst_48 = arith.constant 1.000000e+00 : f32
    %195 = vector.broadcast %cst_48 : f32 to vector<8x128xf32>
    %196 = arith.addf %195, %194 : vector<8x128xf32>
    %197 = arith.divf %195, %196 : vector<8x128xf32>
    %198 = vector.extract_strided_slice %185 {offsets = [0, 256], sizes = [8, 128], strides = [1, 1]} : vector<8x512xf32> to vector<8x128xf32>
    %199 = math.tanh %198 : vector<8x128xf32>
    %200 = vector.extract_strided_slice %185 {offsets = [0, 384], sizes = [8, 128], strides = [1, 1]} : vector<8x512xf32> to vector<8x128xf32>
    %201 = arith.negf %200 : vector<8x128xf32>
    %202 = math.exp %201 : vector<8x128xf32>
    %cst_49 = arith.constant 1.000000e+00 : f32
    %203 = vector.broadcast %cst_49 : f32 to vector<8x128xf32>
    %204 = arith.addf %203, %202 : vector<8x128xf32>
    %205 = arith.divf %203, %204 : vector<8x128xf32>
    %206 = arith.mulf %197, %176 : vector<8x128xf32>
    %207 = arith.mulf %191, %199 : vector<8x128xf32>
    %208 = arith.addf %206, %207 : vector<8x128xf32>
    %209 = math.tanh %208 : vector<8x128xf32>
    %210 = arith.mulf %205, %209 : vector<8x128xf32>
    %c6_i32 = arith.constant 6 : i32
    %c8_i32_50 = arith.constant 8 : i32
    %211 = arith.muli %c6_i32, %c8_i32_50 : i32
    %212 = tpu.assume_multiple %211, 8 : i32
    %213 = arith.truncf %210 : vector<8x128xf32> to vector<8x128xbf16>
    %cst_51 = arith.constant dense<0.000000e+00> : vector<8x512xf32>
    %214 = tpu.matmul %213, %17, %cst_51 {dimension_numbers = #tpu.dot_dimension_numbers<[1], [0], [0], [1], [0, 0, 1, 1], [], []>} : vector<8x128xbf16>, vector<128x512xbf16>, vector<8x512xf32> -> vector<8x512xf32>
    %215 = arith.index_cast %212 : i32 to index
    %c0_52 = arith.constant 0 : index
    %216 = vector.load %arg9[%215, %c0_52] : memref<72x512xf32, #tpu.memory_space<vmem>>, vector<8x512xf32>
    %217 = arith.addf %214, %216 : vector<8x512xf32>
    %218 = vector.extract_strided_slice %217 {offsets = [0, 0], sizes = [8, 128], strides = [1, 1]} : vector<8x512xf32> to vector<8x128xf32>
    %219 = arith.negf %218 : vector<8x128xf32>
    %220 = math.exp %219 : vector<8x128xf32>
    %cst_53 = arith.constant 1.000000e+00 : f32
    %221 = vector.broadcast %cst_53 : f32 to vector<8x128xf32>
    %222 = arith.addf %221, %220 : vector<8x128xf32>
    %223 = arith.divf %221, %222 : vector<8x128xf32>
    %224 = vector.extract_strided_slice %217 {offsets = [0, 128], sizes = [8, 128], strides = [1, 1]} : vector<8x512xf32> to vector<8x128xf32>
    %225 = arith.negf %224 : vector<8x128xf32>
    %226 = math.exp %225 : vector<8x128xf32>
    %cst_54 = arith.constant 1.000000e+00 : f32
    %227 = vector.broadcast %cst_54 : f32 to vector<8x128xf32>
    %228 = arith.addf %227, %226 : vector<8x128xf32>
    %229 = arith.divf %227, %228 : vector<8x128xf32>
    %230 = vector.extract_strided_slice %217 {offsets = [0, 256], sizes = [8, 128], strides = [1, 1]} : vector<8x512xf32> to vector<8x128xf32>
    %231 = math.tanh %230 : vector<8x128xf32>
    %232 = vector.extract_strided_slice %217 {offsets = [0, 384], sizes = [8, 128], strides = [1, 1]} : vector<8x512xf32> to vector<8x128xf32>
    %233 = arith.negf %232 : vector<8x128xf32>
    %234 = math.exp %233 : vector<8x128xf32>
    %cst_55 = arith.constant 1.000000e+00 : f32
    %235 = vector.broadcast %cst_55 : f32 to vector<8x128xf32>
    %236 = arith.addf %235, %234 : vector<8x128xf32>
    %237 = arith.divf %235, %236 : vector<8x128xf32>
    %238 = arith.mulf %229, %208 : vector<8x128xf32>
    %239 = arith.mulf %223, %231 : vector<8x128xf32>
    %240 = arith.addf %238, %239 : vector<8x128xf32>
    %241 = math.tanh %240 : vector<8x128xf32>
    %242 = arith.mulf %237, %241 : vector<8x128xf32>
    %c7_i32 = arith.constant 7 : i32
    %c8_i32_56 = arith.constant 8 : i32
    %243 = arith.muli %c7_i32, %c8_i32_56 : i32
    %244 = tpu.assume_multiple %243, 8 : i32
    %245 = arith.truncf %242 : vector<8x128xf32> to vector<8x128xbf16>
    %cst_57 = arith.constant dense<0.000000e+00> : vector<8x512xf32>
    %246 = tpu.matmul %245, %17, %cst_57 {dimension_numbers = #tpu.dot_dimension_numbers<[1], [0], [0], [1], [0, 0, 1, 1], [], []>} : vector<8x128xbf16>, vector<128x512xbf16>, vector<8x512xf32> -> vector<8x512xf32>
    %247 = arith.index_cast %244 : i32 to index
    %c0_58 = arith.constant 0 : index
    %248 = vector.load %arg9[%247, %c0_58] : memref<72x512xf32, #tpu.memory_space<vmem>>, vector<8x512xf32>
    %249 = arith.addf %246, %248 : vector<8x512xf32>
    %250 = vector.extract_strided_slice %249 {offsets = [0, 0], sizes = [8, 128], strides = [1, 1]} : vector<8x512xf32> to vector<8x128xf32>
    %251 = arith.negf %250 : vector<8x128xf32>
    %252 = math.exp %251 : vector<8x128xf32>
    %cst_59 = arith.constant 1.000000e+00 : f32
    %253 = vector.broadcast %cst_59 : f32 to vector<8x128xf32>
    %254 = arith.addf %253, %252 : vector<8x128xf32>
    %255 = arith.divf %253, %254 : vector<8x128xf32>
    %256 = vector.extract_strided_slice %249 {offsets = [0, 128], sizes = [8, 128], strides = [1, 1]} : vector<8x512xf32> to vector<8x128xf32>
    %257 = arith.negf %256 : vector<8x128xf32>
    %258 = math.exp %257 : vector<8x128xf32>
    %cst_60 = arith.constant 1.000000e+00 : f32
    %259 = vector.broadcast %cst_60 : f32 to vector<8x128xf32>
    %260 = arith.addf %259, %258 : vector<8x128xf32>
    %261 = arith.divf %259, %260 : vector<8x128xf32>
    %262 = vector.extract_strided_slice %249 {offsets = [0, 256], sizes = [8, 128], strides = [1, 1]} : vector<8x512xf32> to vector<8x128xf32>
    %263 = math.tanh %262 : vector<8x128xf32>
    %264 = vector.extract_strided_slice %249 {offsets = [0, 384], sizes = [8, 128], strides = [1, 1]} : vector<8x512xf32> to vector<8x128xf32>
    %265 = arith.negf %264 : vector<8x128xf32>
    %266 = math.exp %265 : vector<8x128xf32>
    %cst_61 = arith.constant 1.000000e+00 : f32
    %267 = vector.broadcast %cst_61 : f32 to vector<8x128xf32>
    %268 = arith.addf %267, %266 : vector<8x128xf32>
    %269 = arith.divf %267, %268 : vector<8x128xf32>
    %270 = arith.mulf %261, %240 : vector<8x128xf32>
    %271 = arith.mulf %255, %263 : vector<8x128xf32>
    %272 = arith.addf %270, %271 : vector<8x128xf32>
    %273 = math.tanh %272 : vector<8x128xf32>
    %274 = arith.mulf %269, %273 : vector<8x128xf32>
    %c8_i32_62 = arith.constant 8 : i32
    %c8_i32_63 = arith.constant 8 : i32
    %275 = arith.muli %c8_i32_62, %c8_i32_63 : i32
    %276 = tpu.assume_multiple %275, 8 : i32
    %277 = arith.truncf %274 : vector<8x128xf32> to vector<8x128xbf16>
    %cst_64 = arith.constant dense<0.000000e+00> : vector<8x512xf32>
    %278 = tpu.matmul %277, %17, %cst_64 {dimension_numbers = #tpu.dot_dimension_numbers<[1], [0], [0], [1], [0, 0, 1, 1], [], []>} : vector<8x128xbf16>, vector<128x512xbf16>, vector<8x512xf32> -> vector<8x512xf32>
    %279 = arith.index_cast %276 : i32 to index
    %c0_65 = arith.constant 0 : index
    %280 = vector.load %arg9[%279, %c0_65] : memref<72x512xf32, #tpu.memory_space<vmem>>, vector<8x512xf32>
    %281 = arith.addf %278, %280 : vector<8x512xf32>
    %282 = vector.extract_strided_slice %281 {offsets = [0, 0], sizes = [8, 128], strides = [1, 1]} : vector<8x512xf32> to vector<8x128xf32>
    %283 = arith.negf %282 : vector<8x128xf32>
    %284 = math.exp %283 : vector<8x128xf32>
    %cst_66 = arith.constant 1.000000e+00 : f32
    %285 = vector.broadcast %cst_66 : f32 to vector<8x128xf32>
    %286 = arith.addf %285, %284 : vector<8x128xf32>
    %287 = arith.divf %285, %286 : vector<8x128xf32>
    %288 = vector.extract_strided_slice %281 {offsets = [0, 128], sizes = [8, 128], strides = [1, 1]} : vector<8x512xf32> to vector<8x128xf32>
    %289 = arith.negf %288 : vector<8x128xf32>
    %290 = math.exp %289 : vector<8x128xf32>
    %cst_67 = arith.constant 1.000000e+00 : f32
    %291 = vector.broadcast %cst_67 : f32 to vector<8x128xf32>
    %292 = arith.addf %291, %290 : vector<8x128xf32>
    %293 = arith.divf %291, %292 : vector<8x128xf32>
    %294 = vector.extract_strided_slice %281 {offsets = [0, 256], sizes = [8, 128], strides = [1, 1]} : vector<8x512xf32> to vector<8x128xf32>
    %295 = math.tanh %294 : vector<8x128xf32>
    %296 = vector.extract_strided_slice %281 {offsets = [0, 384], sizes = [8, 128], strides = [1, 1]} : vector<8x512xf32> to vector<8x128xf32>
    %297 = arith.negf %296 : vector<8x128xf32>
    %298 = math.exp %297 : vector<8x128xf32>
    %cst_68 = arith.constant 1.000000e+00 : f32
    %299 = vector.broadcast %cst_68 : f32 to vector<8x128xf32>
    %300 = arith.addf %299, %298 : vector<8x128xf32>
    %301 = arith.divf %299, %300 : vector<8x128xf32>
    %302 = arith.mulf %293, %272 : vector<8x128xf32>
    %303 = arith.mulf %287, %295 : vector<8x128xf32>
    %304 = arith.addf %302, %303 : vector<8x128xf32>
    %305 = math.tanh %304 : vector<8x128xf32>
    %306 = arith.mulf %301, %305 : vector<8x128xf32>
    %c9_i32 = arith.constant 9 : i32
    %307 = arith.truncf %306 : vector<8x128xf32> to vector<8x128xbf16>
    %c0_69 = arith.constant 0 : index
    %c0_70 = arith.constant 0 : index
    %308 = vector.load %arg4[%c0_69, %c0_70] : memref<128x128xbf16, #tpu.memory_space<vmem>>, vector<128x128xbf16>
    %cst_71 = arith.constant dense<0.000000e+00> : vector<8x128xf32>
    %309 = tpu.matmul %307, %308, %cst_71 {dimension_numbers = #tpu.dot_dimension_numbers<[1], [0], [0], [1], [0, 0, 1, 1], [], []>} : vector<8x128xbf16>, vector<128x128xbf16>, vector<8x128xf32> -> vector<8x128xf32>
    %c0_72 = arith.constant 0 : index
    %c0_73 = arith.constant 0 : index
    %310 = vector.load %arg5[%c0_72, %c0_73] : memref<1x128xf32, #tpu.memory_space<vmem>>, vector<1x128xf32>
    %311 = vector.broadcast %310 : vector<1x128xf32> to vector<8x128xf32>
    %312 = arith.addf %309, %311 : vector<8x128xf32>
    %cst_74 = arith.constant 0.000000e+00 : f32
    %313 = vector.broadcast %cst_74 : f32 to vector<8x128xf32>
    %314 = arith.maximumf %312, %313 : vector<8x128xf32>
    %315 = arith.truncf %314 : vector<8x128xf32> to vector<8x128xbf16>
    %c0_75 = arith.constant 0 : index
    %c0_76 = arith.constant 0 : index
    %316 = vector.load %arg6[%c0_75, %c0_76] : memref<128x1xbf16, #tpu.memory_space<vmem>>, vector<128x1xbf16>
    %cst_77 = arith.constant dense<0.000000e+00> : vector<8x1xf32>
    %317 = tpu.matmul %315, %316, %cst_77 {dimension_numbers = #tpu.dot_dimension_numbers<[1], [0], [0], [1], [0, 0, 1, 1], [], []>} : vector<8x128xbf16>, vector<128x1xbf16>, vector<8x1xf32> -> vector<8x1xf32>
    %c0_78 = arith.constant 0 : index
    %c0_79 = arith.constant 0 : index
    %318 = vector.load %arg7[%c0_78, %c0_79] : memref<1x1xf32, #tpu.memory_space<vmem>>, vector<1x1xf32>
    %319 = vector.broadcast %318 : vector<1x1xf32> to vector<8x1xf32>
    %320 = arith.addf %317, %319 : vector<8x1xf32>
    %321 = arith.negf %320 : vector<8x1xf32>
    %322 = math.exp %321 : vector<8x1xf32>
    %cst_80 = arith.constant 1.000000e+00 : f32
    %323 = vector.broadcast %cst_80 : f32 to vector<8x1xf32>
    %324 = arith.addf %323, %322 : vector<8x1xf32>
    %325 = arith.divf %323, %324 : vector<8x1xf32>
    %c0_81 = arith.constant 0 : index
    %c0_82 = arith.constant 0 : index
    %326 = vector.load %arg8[%c0_81, %c0_82] : memref<8x1xf32, #tpu.memory_space<vmem>>, vector<8x1xf32>
    tpu.vector_store %arg8[%c0_81, %c0_82], %325 {strides = array<i32>} : memref<8x1xf32, #tpu.memory_space<vmem>>, vector<8x1xf32>,
    return
  }
}

</mosaic_0001>

<bundles_post_ra>
// kernel: tpu_custom_call.1
= control target key start
LH: loop header
LB: loop body
LE: loop exit
PB: predicated region body
PF: predicated region fallthrough
CT: control target
= control target key end

     0   :  { %s3014_s0 = inlined_call_operand.vmem [shape: bf16[72,8], index: 0, kind: input, shape index: {}]   ;;  %s3015_s1 = inlined_call_operand.vmem [shape: bf16[8,512], index: 1, kind: input, shape index: {}]   ;;  %s3016_s2 = inlined_call_operand.vmem [shape: f32[1,512], index: 2, kind: input, shape index: {}]   ;;  %s3017_s3 = inlined_call_operand.hbm [shape: bf16[128,512], index: 3, kind: input, shape index: {}]   ;;  %s3018_s4 = inlined_call_operand.vmem [shape: bf16[128,128], index: 4, kind: input, shape index: {}]   ;;  %s3019_s5 = inlined_call_operand.vmem [shape: f32[1,128], index: 5, kind: input, shape index: {}]   ;;  %s3020_s6 = inlined_call_operand.vmem [shape: bf16[128,1], index: 6, kind: input, shape index: {}]   ;;  %s3021_s7 = inlined_call_operand.<no memory space> [shape: f32[1,1], index: 7, kind: input, shape index: {}]   ;;  %s3022_s8 = inlined_call_operand.vmem [shape: f32[8,1], index: 8, kind: output, shape index: {}]  }
   0x1   :  { %v13_v0 = vstv %s3021_s7 }
   0x2   :  { %14 = vst [vmem:[#allocation3] sm:$0x1] %v13_v0 }
   0x3   :  { %15 = vsyncpa [#allocation5], 0  ;;  %s26_s9 = sshll.u32 %s3017_s3, 4  ;;  %s2315_s10 = smov [#allocation4]   ;;  %s27_s9 = int_to_ptr.hbm [resolvable:$true] %s26_s9 }
   0x4   :  { %s28_s11 = sshll.u32 %s2315_s10, 4  ;;  %s2316_s12 = smov 256   ;;  %s29_s11 = int_to_ptr.vmem [resolvable:$true] %s28_s11 }
   0x5   :  { %s2317_s13 = smov 16  }
   0x6   :  { %34 = dma.hbm_to_vmem [thread:$0]  %s27_s9, 4096, %s29_s11, [#allocation5], %s2316_s12, %s2316_s12, %s2317_s13  }
   0x7   :  { %2313 = dma.done.wait [#allocation5], 4096  }
   0x8   :  { %2314 = vsyncadd [#allocation5], 4294963200  ;;  %v57_v1 = vld [vmem:[%s3015_s1] sm:$0xff]  ;;  %v58_v6 = vld [vmem:[%s3015_s1 + $0x8] sm:$0xff]  ;;  %vm118_vm0 = vcmask 1043456   ;;  %vm102_vm1 = vcmask 64512  }
   0x9   :  { %v56_v2 = vld [vmem:[%s3014_s0 + $0x20] sm:$0xf]  ;;  %v94_v3 = vunpack.c.l.b16 %v57_v1  ;;  %v95_v4 = vunpack.c.h.b16 %v57_v1  ;;  %v97_v7 = vunpack.c.h.b16 %v58_v6  ;;  %v96_v8 = vunpack.c.l.b16 %v58_v6  ;;  %v2114_v9 = vld [vmem:[#allocation4 + $0xec] sm:$0xf]  ;;  %v1983_v14 = vld [vmem:[#allocation4 + $0xe8] sm:$0xf] }
   0xa   :  { %v86_v5 = vunpack.c.l.b16 %v56_v2  ;;  %v2382_v12 = vld [vmem:[%s3014_s0] sm:$0xff]  ;;  %v2116_v15 = vld [vmem:[#allocation4 + $0xf4] sm:$0xf0]  ;;  %v2115_v19 = vld [vmem:[#allocation4 + $0xec] sm:$0xf0] }
   0xb   :  { %v98_v10 = vpack.c.b16 %v94_v3, %v94_v3  ;;  %v99_v11 = vpack.c.b16 %v95_v4, %v95_v4  ;;  %v1985_v13 = vld [vmem:[#allocation4 + $0xf8] sm:$0xf0]  ;;  %v101_v16 = vpack.c.b16 %v97_v7, %v97_v7  ;;  %v100_v17 = vpack.c.b16 %v96_v8, %v96_v8  ;;  %v1975_v18 = vld [vmem:[#allocation4 + $0xe0] sm:$0xf]  ;;  %v2113_v20 = vld [vmem:[#allocation4 + $0xe4] sm:$0xf] }
   0xc   :  { %v2386_v23 = vpack.c.b16 %v86_v5, %v86_v5  ;;  %v1977_v24 = vld [vmem:[#allocation4 + $0xf0] sm:$0xf0]  ;;  %v2390_v27 = vor.u32 %v2114_v9, %v1985_v13  ;;  %v2392_v28 = vor.u32 %v2116_v15, %v1983_v14  ;;  %v2110_v29 = vld [vmem:[#allocation4 + $0xcc] sm:$0xf]  ;;  %v1969_v30 = vld [vmem:[#allocation4 + $0xd8] sm:$0xf0]  ;;  %v2394_v31 = vor.u32 %v2115_v19, %v1975_v18 }
   0xd   :  { %v120_v21 = vsel %vm118_vm0, %v98_v10, 0  ;;  %v123_v22 = vsel %vm118_vm0, %v99_v11, 0  ;;  %v129_v25 = vsel %vm118_vm0, %v101_v16, 0  ;;  %v126_v26 = vsel %vm118_vm0, %v100_v17, 0  ;;  %v1959_v33 = vld [vmem:[#allocation4 + $0xc0] sm:$0xf] }
   0xe   :  { %138 = vmatpush.bf16.msra.mxu0 %v120_v21  ;;  %2133 = vmatpush.bf16.msra.mxu2 %v120_v21  ;;  %v2396_v32 = vor.u32 %v2113_v20, %v1977_v24  ;;  %v2111_v34 = vld [vmem:[#allocation4 + $0xcc] sm:$0xf0]  ;;  %v2109_v35 = vld [vmem:[#allocation4 + $0xc4] sm:$0xf]  ;;  %v2408_v36 = vor.u32 %v2110_v29, %v1969_v30  ;;  %v1961_v37 = vld [vmem:[#allocation4 + $0xd0] sm:$0xf0] }
   0xf   :  { %171 = vmatpush.bf16.msra.mxu1 %v123_v22  ;;  %2134 = vmatpush.bf16.msra.mxu3 %v123_v22  ;;  %v1967_v38 = vld [vmem:[#allocation4 + $0xc8] sm:$0xf]  ;;  %v2112_v39 = vld [vmem:[#allocation4 + $0xd4] sm:$0xf0]  ;;  %v2412_v40 = vor.u32 %v2111_v34, %v1959_v33  ;;  %v2414_v41 = vor.u32 %v2109_v35, %v1961_v37  ;;  %v2106_v43 = vld [vmem:[#allocation4 + $0xac] sm:$0xf] }
  0x10   :  { %v2416_v42 = vor.u32 %v2112_v39, %v1967_v38  ;;  %v1953_v44 = vld [vmem:[#allocation4 + $0xb8] sm:$0xf0]  ;;  %v1943_v45 = vld [vmem:[#allocation4 + $0xa0] sm:$0xf]  ;;  %v2107_v46 = vld [vmem:[#allocation4 + $0xac] sm:$0xf0] }
  0x11   :  { %1841 = vmatmul.msk.bf16.vlgmr.msra.gmra.mxu0 %vm102_vm1, %v2382_v12  ;;  %1845 = vmatmul.msk.bf16.vlgmr.msra.gmra.mxu2 %vm102_vm1, %v2386_v23  ;;  %v2105_v47 = vld [vmem:[#allocation4 + $0xa4] sm:$0xf]  ;;  %v1945_v48 = vld [vmem:[#allocation4 + $0xb0] sm:$0xf0]  ;;  %v2420_v49 = vor.u32 %v2106_v43, %v1953_v44  ;;  %v1951_v50 = vld [vmem:[#allocation4 + $0xa8] sm:$0xf]  ;;  %v2424_v52 = vor.u32 %v2107_v46, %v1943_v45 }
  0x12   :  { %204 = vmatpush.bf16.msrb.mxu2 %v126_v26  ;;  %1846 = vmatmul.msk.bf16.vlgmr.msra.gmra.mxu1 %vm102_vm1, %v2382_v12  ;;  %v2108_v51 = vld [vmem:[#allocation4 + $0xb4] sm:$0xf0]  ;;  %v2426_v53 = vor.u32 %v2105_v47, %v1945_v48  ;;  %v1927_v54 = vld [vmem:[#allocation4 + $0x80] sm:$0xf]  ;;  %v2102_v56 = vld [vmem:[#allocation4 + $0x8c] sm:$0xf] }
  0x13   :  { %237 = vmatpush.bf16.msrb.mxu3 %v129_v25  ;;  %527 = vmatpush.bf16.msrb.mxu0 %v2394_v31  ;;  %v2428_v55 = vor.u32 %v2108_v51, %v1951_v50  ;;  %v1937_v57 = vld [vmem:[#allocation4 + $0x98] sm:$0xf0]  ;;  %v2103_v58 = vld [vmem:[#allocation4 + $0x8c] sm:$0xf0]  ;;  %v2101_v59 = vld [vmem:[#allocation4 + $0x84] sm:$0xf] }
  0x14   :  { %1850 = vmatmul.msk.bf16.vlgmr.msra.gmra.mxu3 %vm102_vm1, %v2386_v23  ;;  %540 = vmatpush.bf16.msrb.mxu1 %v2396_v32  ;;  %v1929_v60 = vld [vmem:[#allocation4 + $0x90] sm:$0xf0]  ;;  %v2432_v61 = vor.u32 %v2102_v56, %v1937_v57  ;;  %v2436_v62 = vor.u32 %v2103_v58, %v1927_v54  ;;  %v2082_v0 = vld [vmem:[%s3014_s0 + $0x8] sm:$0xff]  ;;  %v1911_v1 = vld [vmem:[#allocation4 + $0x60] sm:$0xf] }
  0x15   :  { %v2438_v63 = vor.u32 %v2101_v59, %v1929_v60  ;;  %v2099_v2 = vld [vmem:[#allocation4 + $0x6c] sm:$0xf0]  ;;  %v2097_v3 = vld [vmem:[#allocation4 + $0x64] sm:$0xf]  ;;  %v1913_v5 = vld [vmem:[#allocation4 + $0x70] sm:$0xf0] }
  0x16   :  { %553 = vmatpush.bf16.msra.mxu2 %v2392_v28  ;;  %v2449_v4 = vor.u32 %v2099_v2, %v1911_v1  ;;  %v2454_v6 = vor.u32 %v2097_v3, %v1913_v5  ;;  %v1895_v7 = vld [vmem:[#allocation4 + $0x40] sm:$0xf]  ;;  %v2095_v8 = vld [vmem:[#allocation4 + $0x4c] sm:$0xf0]  ;;  %v2093_v9 = vld [vmem:[#allocation4 + $0x44] sm:$0xf] }
  0x17   :  { %566 = vmatpush.bf16.msra.mxu3 %v2390_v27  ;;  %528 = vmatpush.bf16.msrb.mxu0 %v2412_v40  ;;  %v1897_v10 = vld [vmem:[#allocation4 + $0x50] sm:$0xf0]  ;;  %v1935_v11 = vld [vmem:[#allocation4 + $0x88] sm:$0xf]  ;;  %v2104_v13 = vld [vmem:[#allocation4 + $0x94] sm:$0xf0]  ;;  %v2458_v14 = vor.u32 %v2095_v8, %v1895_v7 }
  0x18   :  { %541 = vmatpush.bf16.msrb.mxu1 %v2414_v41  ;;  %v2460_v15 = vor.u32 %v2093_v9, %v1897_v10  ;;  %v2462_v16 = vor.u32 %v2104_v13, %v1935_v11  ;;  %v2098_v17 = vld [vmem:[#allocation4 + $0x6c] sm:$0xf]  ;;  %v1879_v18 = vld [vmem:[#allocation4 + $0x20] sm:$0xf]  ;;  %v2091_v20 = vld [vmem:[#allocation4 + $0x2c] sm:$0xf0] }
  0x19   :  { %v2089_v21 = vld [vmem:[#allocation4 + $0x24] sm:$0xf]  ;;  %v1881_v22 = vld [vmem:[#allocation4 + $0x30] sm:$0xf0]  ;;  %v2470_v24 = vor.u32 %v2091_v20, %v1879_v18  ;;  %v1863_v26 = vld [vmem:[#allocation4] sm:$0xf] }
  0x1a   :  { %554 = vmatpush.bf16.msra.mxu2 %v2416_v42  ;;  %v2472_v25 = vor.u32 %v2089_v21, %v1881_v22  ;;  %v2087_v29 = vld [vmem:[#allocation4 + $0xc] sm:$0xf0]  ;;  %v2085_v30 = vld [vmem:[#allocation4 + $0x4] sm:$0xf]  ;;  %v1865_v33 = vld [vmem:[#allocation4 + $0x10] sm:$0xf0] }
  0x1b   :  { %567 = vmatpush.bf16.msra.mxu3 %v2408_v36  ;;  %529 = vmatpush.bf16.msrb.mxu0 %v2424_v52  ;;  %v2476_v34 = vor.u32 %v2087_v29, %v1863_v26  ;;  %v2478_v35 = vor.u32 %v2085_v30, %v1865_v33  ;;  %v2083_v37 = vld [vmem:[%s3014_s0 + $0x10] sm:$0xff]  ;;  %v1919_v38 = vld [vmem:[#allocation4 + $0x68] sm:$0xf]  ;;  %v2100_v39 = vld [vmem:[#allocation4 + $0x74] sm:$0xf0]  ;;  %v2318_v8 = vmov 0  }
  0x1c   :  { %542 = vmatpush.bf16.msrb.mxu1 %v2426_v53  ;;  %v2094_v43 = vld [vmem:[#allocation4 + $0x4c] sm:$0xf]  ;;  %v2489_v44 = vor.u32 %v2100_v39, %v1919_v38  ;;  %v1905_v45 = vld [vmem:[#allocation4 + $0x58] sm:$0xf0]  ;;  %v1903_v46 = vld [vmem:[#allocation4 + $0x48] sm:$0xf] }
  0x1d   :  { %v2096_v47 = vld [vmem:[#allocation4 + $0x54] sm:$0xf0]  ;;  %v2493_v48 = vor.u32 %v2094_v43, %v1905_v45  ;;  %v2090_v50 = vld [vmem:[#allocation4 + $0x2c] sm:$0xf]  ;;  %v1889_v51 = vld [vmem:[#allocation4 + $0x38] sm:$0xf0] }
  0x1e   :  { %555 = vmatpush.bf16.msra.mxu2 %v2428_v55  ;;  %v2496_v54 = vor.u32 %v2096_v47, %v1903_v46  ;;  %v2499_v56 = vor.u32 %v2090_v50, %v1889_v51  ;;  %v2084_v57 = vld [vmem:[%s3014_s0 + $0x18] sm:$0xff]  ;;  %v1887_v58 = vld [vmem:[#allocation4 + $0x28] sm:$0xf]  ;;  %v2086_v60 = vld [vmem:[#allocation4 + $0xc] sm:$0xf] }
  0x1f   :  { %568 = vmatpush.bf16.msra.mxu3 %v2420_v49  ;;  %530 = vmatpush.bf16.msrb.mxu0 %v2436_v62  ;;  %v2092_v59 = vld [vmem:[#allocation4 + $0x34] sm:$0xf0]  ;;  %v1873_v1 = vld [vmem:[#allocation4 + $0x18] sm:$0xf0]  ;;  %v1871_v2 = vld [vmem:[#allocation4 + $0x8] sm:$0xf] }
  0x20   :  { %543 = vmatpush.bf16.msrb.mxu1 %v2438_v63  ;;  %v2088_v3 = vld [vmem:[#allocation4 + $0x14] sm:$0xf0]  ;;  %v2520_v5 = vor.u32 %v2086_v60, %v1873_v1  ;;  %v59_v9 = vld [vmem:[%s3016_s2] sm:$0xf] }
  0x21   :  { %1842 = vmatmul.msk.bf16.gmra.mxu0 %vm102_vm1, %v2082_v0  ;;  %1851 = vmatmul.msk.bf16.vlgmr.msrb.gmra.mxu2 %vm102_vm1, %v2382_v12  ;;  %v2523_v7 = vor.u32 %v2088_v3, %v1871_v2  ;;  %v2590_v11 = vperm.slane %v59_v9, 0  ;;  %v2592_v13 = vperm.slane %v59_v9, 1  ;;  %v2628_v60 = vperm.slane %v59_v9, 2 }
  0x22   :  { %1847 = vmatmul.msk.bf16.gmra.mxu1 %vm102_vm1, %v2082_v0  ;;  %556 = vmatpush.bf16.msra.mxu2 %v2462_v16  ;;  %v2630_v1 = vperm.slane %v59_v9, 3 }
  0x23   :  { %569 = vmatpush.bf16.msra.mxu3 %v2432_v61  ;;  %531 = vmatpush.bf16.msrb.mxu0 %v2449_v4 }
  0x24   :  { %1856 = vmatmul.msk.bf16.vlgmr.msrb.gmra.mxu3 %vm102_vm1, %v2382_v12  ;;  %544 = vmatpush.bf16.msrb.mxu1 %v2454_v6  ;;  %v1921_v12 = vld [vmem:[#allocation4 + $0x78] sm:$0xf0] }
  0x25   :  { %v2464_v19 = vor.u32 %v2098_v17, %v1921_v12 }
  0x26   :  { %557 = vmatpush.bf16.msra.mxu2 %v2489_v44 }
  0x27   :  { %570 = vmatpush.bf16.msra.mxu3 %v2464_v19  ;;  %532 = vmatpush.bf16.msrb.mxu0 %v2458_v14 }
  0x28   :  { %545 = vmatpush.bf16.msrb.mxu1 %v2460_v15 }
  0x2a   :  { %558 = vmatpush.bf16.msra.mxu2 %v2496_v54 }
  0x2b   :  { %533 = vmatpush.bf16.msrb.mxu0 %v2470_v24  ;;  %571 = vmatpush.bf16.msra.mxu3 %v2493_v48 }
  0x2c   :  { %546 = vmatpush.bf16.msrb.mxu1 %v2472_v25 }
  0x2f   :  { %534 = vmatpush.bf16.msrb.mxu0 %v2476_v34  ;;  %572 = vmatpush.bf16.msra.mxu3 %v2499_v56 }
  0x30   :  { %547 = vmatpush.bf16.msrb.mxu1 %v2478_v35 }
  0x31   :  { %1843 = vmatmul.msk.bf16.gmra.mxu0 %vm102_vm1, %v2083_v37  ;;  %1852 = vmatmul.msk.bf16.gmra.mxu2 %vm102_vm1, %v2082_v0 }
  0x32   :  { %1848 = vmatmul.msk.bf16.gmra.mxu1 %vm102_vm1, %v2083_v37 }
  0x33   :  { %650 = vmatpush.bf16.msra.mxu0 %v2394_v31  ;;  %573 = vmatpush.bf16.msra.mxu3 %v2520_v5 }
  0x34   :  { %1857 = vmatmul.msk.bf16.gmra.mxu3 %vm102_vm1, %v2082_v0  ;;  %663 = vmatpush.bf16.msra.mxu1 %v2396_v32  ;;  %v2516_v0 = vor.u32 %v2092_v59, %v1887_v58 }
  0x36   :  { %559 = vmatpush.bf16.msra.mxu2 %v2516_v0 }
  0x37   :  { %651 = vmatpush.bf16.msra.mxu0 %v2412_v40  ;;  %689 = vmatpush.bf16.msrb.mxu3 %v2390_v27 }
  0x38   :  { %664 = vmatpush.bf16.msra.mxu1 %v2414_v41 }
  0x3a   :  { %560 = vmatpush.bf16.msra.mxu2 %v2523_v7 }
  0x3b   :  { %652 = vmatpush.bf16.msra.mxu0 %v2424_v52  ;;  %690 = vmatpush.bf16.msrb.mxu3 %v2408_v36 }
  0x3c   :  { %665 = vmatpush.bf16.msra.mxu1 %v2426_v53 }
  0x3e   :  { %676 = vmatpush.bf16.msrb.mxu2 %v2392_v28 }
  0x3f   :  { %653 = vmatpush.bf16.msra.mxu0 %v2436_v62  ;;  %691 = vmatpush.bf16.msrb.mxu3 %v2420_v49 }
  0x40   :  { %666 = vmatpush.bf16.msra.mxu1 %v2438_v63 }
  0x41   :  { %1844 = vmatmul.msk.bf16.gmra.mxu0 %vm102_vm1, %v2084_v57  ;;  %1853 = vmatmul.msk.bf16.gmra.mxu2 %vm102_vm1, %v2083_v37 }
  0x42   :  { %1849 = vmatmul.msk.bf16.gmra.mxu1 %vm102_vm1, %v2084_v57  ;;  %677 = vmatpush.bf16.msrb.mxu2 %v2416_v42 }
  0x43   :  { %654 = vmatpush.bf16.msra.mxu0 %v2449_v4  ;;  %692 = vmatpush.bf16.msrb.mxu3 %v2432_v61 }
  0x44   :  { %1858 = vmatmul.msk.bf16.gmra.mxu3 %vm102_vm1, %v2083_v37  ;;  %667 = vmatpush.bf16.msra.mxu1 %v2454_v6 }
  0x46   :  { %678 = vmatpush.bf16.msrb.mxu2 %v2428_v55 }
  0x47   :  { %655 = vmatpush.bf16.msra.mxu0 %v2458_v14  ;;  %693 = vmatpush.bf16.msrb.mxu3 %v2464_v19 }
  0x48   :  { %668 = vmatpush.bf16.msra.mxu1 %v2460_v15 }
  0x4a   :  { %679 = vmatpush.bf16.msrb.mxu2 %v2462_v16 }
  0x4b   :  { %656 = vmatpush.bf16.msra.mxu0 %v2470_v24  ;;  %694 = vmatpush.bf16.msrb.mxu3 %v2493_v48 }
  0x4c   :  { %669 = vmatpush.bf16.msra.mxu1 %v2472_v25 }
  0x4e   :  { %680 = vmatpush.bf16.msrb.mxu2 %v2489_v44 }
  0x4f   :  { %657 = vmatpush.bf16.msra.mxu0 %v2476_v34  ;;  %695 = vmatpush.bf16.msrb.mxu3 %v2499_v56 }
  0x50   :  { %670 = vmatpush.bf16.msra.mxu1 %v2478_v35 }
  0x51   :  { %1854 = vmatmul.msk.bf16.gmra.mxu2 %vm102_vm1, %v2084_v57  ;;  %535 = vmatmul.bf16.vlgmr.msrb.gmra.mxu0 %v2318_v8 }
  0x52   :  { %548 = vmatmul.bf16.vlgmr.msrb.gmra.mxu1 %v2318_v8  ;;  %681 = vmatpush.bf16.msrb.mxu2 %v2496_v54 }
  0x53   :  { %773 = vmatpush.bf16.msrb.mxu0 %v2394_v31  ;;  %696 = vmatpush.bf16.msrb.mxu3 %v2520_v5 }
  0x54   :  { %1859 = vmatmul.msk.bf16.gmra.mxu3 %vm102_vm1, %v2084_v57  ;;  %786 = vmatpush.bf16.msrb.mxu1 %v2396_v32 }
  0x56   :  { %682 = vmatpush.bf16.msrb.mxu2 %v2516_v0 }
  0x57   :  { %774 = vmatpush.bf16.msrb.mxu0 %v2412_v40 }
  0x58   :  { %787 = vmatpush.bf16.msrb.mxu1 %v2414_v41 }
  0x5a   :  { %683 = vmatpush.bf16.msrb.mxu2 %v2523_v7 }
  0x5b   :  { %775 = vmatpush.bf16.msrb.mxu0 %v2424_v52 }
  0x5c   :  { %788 = vmatpush.bf16.msrb.mxu1 %v2426_v53 }
  0x5f   :  { %776 = vmatpush.bf16.msrb.mxu0 %v2436_v62 }
  0x60   :  { %789 = vmatpush.bf16.msrb.mxu1 %v2438_v63 }
  0x61   :  { %1855 = vmatmul.msk.bf16.gmra.mxu2 %vm102_vm1, %v2386_v23 }
  0x63   :  { %777 = vmatpush.bf16.msrb.mxu0 %v2449_v4 }
  0x64   :  { %1860 = vmatmul.msk.bf16.gmra.mxu3 %vm102_vm1, %v2386_v23  ;;  %790 = vmatpush.bf16.msrb.mxu1 %v2454_v6 }
  0x67   :  { %778 = vmatpush.bf16.msrb.mxu0 %v2458_v14 }
  0x68   :  { %791 = vmatpush.bf16.msrb.mxu1 %v2460_v15 }
  0x6b   :  { %779 = vmatpush.bf16.msrb.mxu0 %v2470_v24 }
  0x6c   :  { %792 = vmatpush.bf16.msrb.mxu1 %v2472_v25 }
  0x6f   :  { %780 = vmatpush.bf16.msrb.mxu0 %v2476_v34 }
  0x70   :  { %793 = vmatpush.bf16.msrb.mxu1 %v2478_v35 }
  0x71   :  { %561 = vmatmul.bf16.vlgmr.msra.gmra.mxu2 %v2318_v8 }
  0x72   :  { %799 = vmatpush.bf16.msra.mxu2 %v2392_v28 }
  0x74   :  { %574 = vmatmul.bf16.vlgmr.msra.gmra.mxu3 %v2318_v8 }
  0x75   :  { %812 = vmatpush.bf16.msra.mxu3 %v2390_v27 }
  0x76   :  { %800 = vmatpush.bf16.msra.mxu2 %v2416_v42 }
  0x79   :  { %813 = vmatpush.bf16.msra.mxu3 %v2408_v36 }
  0x7a   :  { %801 = vmatpush.bf16.msra.mxu2 %v2428_v55 }
  0x7d   :  { %814 = vmatpush.bf16.msra.mxu3 %v2420_v49 }
  0x7e   :  { %802 = vmatpush.bf16.msra.mxu2 %v2462_v16 }
  0x81   :  { %815 = vmatpush.bf16.msra.mxu3 %v2432_v61 }
  0x82   :  { %803 = vmatpush.bf16.msra.mxu2 %v2489_v44 }
  0x85   :  { %816 = vmatpush.bf16.msra.mxu3 %v2464_v19 }
  0x86   :  { %804 = vmatpush.bf16.msra.mxu2 %v2496_v54 }
  0x89   :  { %817 = vmatpush.bf16.msra.mxu3 %v2493_v48 }
  0x8a   :  { %805 = vmatpush.bf16.msra.mxu2 %v2516_v0 }
  0x8d   :  { %818 = vmatpush.bf16.msra.mxu3 %v2499_v56 }
  0x8e   :  { %v140_v23 = vpop.f32.mrf.mxu0  ;;  %806 = vmatpush.bf16.msra.mxu2 %v2523_v7 }
  0x8f   :  { %v173_v10 = vpop.f32.mrf.mxu1 }
  0x91   :  { %819 = vmatpush.bf16.msra.mxu3 %v2520_v5 }
  0x94   :  { %v160_v17 = vpop.f32.mrf.mxu2 }
  0x95   :  { %v2595_v12 = vadd.f32 %v160_v17, %v2590_v11 }
  0x96   :  { %v2600_v21 = vpop.f32.mrf.mxu0 }
  0x97   :  { %3023 = vst [vmem:[#allocation7_spill] sm:$0xff] %v2595_v12  ;;  %v193_v18 = vpop.f32.mrf.mxu3  ;;  %v2602_v22 = vpop.f32.mrf.mxu1 }
  0x98   :  { %v2598_v20 = vadd.f32 %v193_v18, %v2592_v13 }
  0x9a   :  { %3024 = vst [vmem:[#allocation8_spill] sm:$0xff] %v2598_v20 }
  0x9c   :  { %v162_v26 = vpop.f32.mrf.mxu2 }
  0x9e   :  { %v145_v30 = vpop.f32.mrf.mxu0 }
  0x9f   :  { %v195_v29 = vpop.f32.mrf.mxu3  ;;  %v2605_v33 = vadd.f32 %v145_v30, %v2590_v11  ;;  %v178_v37 = vpop.f32.mrf.mxu1 }
  0xa0   :  { %v2608_v38 = vadd.f32 %v178_v37, %v2592_v13 }
  0xa1   :  { %3025 = vst [vmem:[#allocation9_spill] sm:$0xff] %v2605_v33 }
  0xa2   :  { %3026 = vst [vmem:[#allocation10_spill] sm:$0xff] %v2608_v38 }
  0xa4   :  { %v2610_v39 = vpop.f32.mrf.mxu2 }
  0xa6   :  { %v2614_v45 = vpop.f32.mrf.mxu0 }
  0xa7   :  { %v2612_v43 = vpop.f32.mrf.mxu3  ;;  %3027 = vst [vmem:[#allocation11_spill] sm:$0xff] %v2614_v45  ;;  %v2616_v46 = vpop.f32.mrf.mxu1  ;;  %v207_v45 = vadd.f32 %v2610_v39, %v2628_v60 }
  0xa8   :  { %3028 = vst [vmem:[#allocation12_spill] sm:$0xff] %v2616_v46 }
  0xac   :  { %v2618_v47 = vpop.f32.mrf.mxu2 }
  0xae   :  { %v150_v51 = vpop.f32.mrf.mxu0 }
  0xaf   :  { %v2620_v50 = vpop.f32.mrf.mxu3  ;;  %v2623_v57 = vadd.f32 %v150_v51, %v2590_v11  ;;  %v183_v58 = vpop.f32.mrf.mxu1 }
  0xb0   :  { %v2626_v59 = vadd.f32 %v183_v58, %v2592_v13 }
  0xb1   :  { %3029 = vst [vmem:[#allocation13_spill] sm:$0xff] %v2623_v57 }
  0xb2   :  { %3030 = vst [vmem:[#allocation14_spill] sm:$0xff] %v2626_v59 }
  0xb4   :  { %v211_v2 = vpop.f32.mrf.mxu2 }
  0xb5   :  { %v2633_v3 = vadd.f32 %v211_v2, %v2628_v60 }
  0xb6   :  { %v152_v18 = vpop.f32.mrf.mxu0 }
  0xb7   :  { %3031 = vst [vmem:[#allocation15_spill] sm:$0xff] %v2633_v3  ;;  %v244_v8 = vpop.f32.mrf.mxu3  ;;  %v2639_v26 = vadd.f32 %v152_v18, %v2590_v11  ;;  %v185_v29 = vpop.f32.mrf.mxu1 }
  0xb8   :  { %v2636_v17 = vadd.f32 %v244_v8, %v2630_v1  ;;  %v2642_v30 = vadd.f32 %v185_v29, %v2592_v13 }
  0xb9   :  { %3033 = vst [vmem:[#allocation17_spill] sm:$0xff] %v2639_v26 }
  0xba   :  { %3032 = vst [vmem:[#allocation16_spill] sm:$0xff] %v2636_v17 }
  0xbb   :  { %3034 = vst [vmem:[#allocation18_spill] sm:$0xff] %v2642_v30 }
  0xbc   :  { %v2644_v37 = vpop.f32.mrf.mxu2 }
  0xbd   :  { %3035 = vst [vmem:[#allocation19_spill] sm:$0xff] %v2644_v37 }
  0xbe   :  { %v155_v51 = vpop.f32.mrf.mxu0 }
  0xbf   :  { %v2646_v9 = vpop.f32.mrf.mxu3  ;;  %v2649_v58 = vadd.f32 %v155_v51, %v2590_v11  ;;  %v188_v2 = vpop.f32.mrf.mxu1 }
  0xc0   :  { %3036 = vst [vmem:[#allocation20_spill] sm:$0xff] %v2646_v9  ;;  %v2652_v8 = vadd.f32 %v188_v2, %v2592_v13  ;;  %v141_v2 = vadd.f32 %v140_v23, %v2590_v11 }
  0xc1   :  { %3037 = vst [vmem:[#allocation21_spill] sm:$0xff] %v2649_v58 }
  0xc2   :  { %3038 = vst [vmem:[#allocation22_spill] sm:$0xff] %v2652_v8 }
  0xc4   :  { %v216_v20 = vpop.f32.mrf.mxu2 }
  0xc5   :  { %v2655_v18 = vadd.f32 %v216_v20, %v2628_v60 }
  0xc6   :  { %v157_v30 = vpop.f32.mrf.mxu0 }
  0xc7   :  { %3039 = vst [vmem:[#allocation23_spill] sm:$0xff] %v2655_v18  ;;  %v249_v12 = vpop.f32.mrf.mxu3  ;;  %v2661_v26 = vadd.f32 %v157_v30, %v2590_v11  ;;  %v190_v59 = vpop.f32.mrf.mxu1  ;;  %v174_v18 = vadd.f32 %v173_v10, %v2592_v13 }
  0xc8   :  { %v2658_v29 = vadd.f32 %v249_v12, %v2630_v1  ;;  %v2664_v51 = vadd.f32 %v190_v59, %v2592_v13 }
  0xc9   :  { %3041 = vst [vmem:[#allocation25_spill] sm:$0xff] %v2661_v26 }
  0xca   :  { %3040 = vst [vmem:[#allocation24_spill] sm:$0xff] %v2658_v29 }
  0xcb   :  { %3042 = vst [vmem:[#allocation26_spill] sm:$0xff] %v2664_v51 }
  0xcc   :  { %v218_v58 = vpop.f32.mrf.mxu2 }
  0xcd   :  { %v2668_v8 = vadd.f32 %v218_v58, %v2628_v60 }
  0xce   :  { %v536_v29 = vpop.f32.mrf.mxu0 }
  0xcf   :  { %3043 = vst [vmem:[#allocation27_spill] sm:$0xff] %v2668_v8  ;;  %v251_v20 = vpop.f32.mrf.mxu3  ;;  %v537_v57 = vadd.f32 %v536_v29, %v141_v2  ;;  %v549_v30 = vpop.f32.mrf.mxu1 }
  0xd0   :  { %v2672_v12 = vadd.f32 %v251_v20, %v2630_v1  ;;  %v550_v26 = vadd.f32 %v549_v30, %v174_v18 }
  0xd1   :  { %v1989_v37 = vmul.f32 -1.442695, %v537_v57 }
  0xd2   :  { %3044 = vst [vmem:[#allocation28_spill] sm:$0xff] %v2672_v12  ;;  %v1990_v9 = vmul.f32 -1.442695, %v550_v26 }
  0xd3   :  { %2141 = vpow2.f32 %v1989_v37 }
  0xd4   :  { %2143 = vpow2.f32 %v1990_v9  ;;  %v221_v59 = vpop.f32.mrf.mxu2 }
  0xd5   :  { %v2675_v23 = vadd.f32 %v221_v59, %v2628_v60  ;;  %v299_v59 = vlaneseq }
  0xd6   :  { %v538_v10 = vpop.f32.mrf.mxu0 }
  0xd7   :  { %3045 = vst [vmem:[#allocation29_spill] sm:$0xff] %v2675_v23  ;;  %v254_v58 = vpop.f32.mrf.mxu3  ;;  %v551_v8 = vpop.f32.mrf.mxu1 }
  0xd8   :  { %v2678_v51 = vadd.f32 %v254_v58, %v2630_v1 }
  0xd9   :  { %v2142_v20 = vpop.eup %2141 }
  0xda   :  { %3046 = vst [vmem:[#allocation30_spill] sm:$0xff] %v2678_v51  ;;  %v2144_v12 = vpop.eup %2143  ;;  %v582_v2 = vadd.f32 1.0, %v2142_v20  ;;  %v300_v20 = vand.u32 127, %v299_v59 }
  0xdb   :  { %v601_v46 = vadd.f32 1.0, %v2144_v12 }
  0xdc   :  { %v223_v29 = vpop.f32.mrf.mxu2  ;;  %v594_v38 = vand.u32 2147483648, %v582_v2  ;;  %vm588_vm7 = vweird.f32 %v582_v2  ;;  %v592_v39 = vand.u32 2147483647, %v582_v2 }
  0xdd   :  { %v2681_v57 = vadd.f32 %v223_v29, %v2628_v60  ;;  %2145 = vrcp.f32 %v601_v46  ;;  %vm607_vm4 = vweird.f32 %v601_v46  ;;  %v613_v59 = vand.u32 2147483648, %v601_v46 }
  0xde   :  { %2147 = vrcp.f32 %v582_v2  ;;  %vm593_vm10 = vcmp.eq.f32.partialorder %v592_v39, 8.507059e+37 }
  0xdf   :  { %3047 = vst [vmem:[#allocation31_spill] sm:$0xff] %v2681_v57  ;;  %v256_v26 = vpop.f32.mrf.mxu3 }
  0xe0   :  { %v2684_v37 = vadd.f32 %v256_v26, %v2630_v1 }
  0xe2   :  { %3048 = vst [vmem:[#allocation32_spill] sm:$0xff] %v2684_v37  ;;  %v302_v37 = vadd.s32 256, %v300_v20  ;;  %v611_v20 = vand.u32 2147483647, %v601_v46 }
  0xe3   :  { %v2146_v18 = vpop.eup %2145 }
  0xe4   :  { %v226_v9 = vpop.f32.mrf.mxu2  ;;  %v2148_v58 = vpop.eup %2147  ;;  %v603_v10 = vmul.f32 %v2146_v18, %v601_v46  ;;  %vm306_vm2 = vcmp.ge.s32.totalorder %v302_v37, 320  ;;  %vm608_vm3 = vweird.f32 %v2146_v18  ;;  %vm612_vm9 = vcmp.eq.f32.partialorder %v611_v20, 8.507059e+37 }
  0xe5   :  { %v2687_v30 = vadd.f32 %v226_v9, %v2628_v60  ;;  %v584_v29 = vmul.f32 %v2148_v58, %v582_v2  ;;  %vm589_vm5 = vweird.f32 %v2148_v58  ;;  %vm609_vm6 = vmor %vm607_vm4, %vm608_vm3 }
  0xe6   :  { %v604_v57 = vsub.f32 1.0, %v603_v10  ;;  %vm590_vm8 = vmor %vm588_vm7, %vm589_vm5 }
  0xe7   :  { %3049 = vst [vmem:[#allocation33_spill] sm:$0xff] %v2687_v30  ;;  %v259_v8 = vpop.f32.mrf.mxu3  ;;  %v585_v51 = vsub.f32 1.0, %v584_v29  ;;  %v240_v30 = vadd.f32 %v2612_v43, %v2630_v1  ;;  %v614_v43 = vor.u32 1.1754944e-38, %v613_v59 }
  0xe8   :  { %v2690_v12 = vadd.f32 %v259_v8, %v2630_v1  ;;  %v605_v3 = vmul.f32 %v2146_v18, %v604_v57  ;;  %v322_v8 = vsel %vm306_vm2, 0.0, %v207_v45 }
  0xe9   :  { %v586_v9 = vmul.f32 %v2148_v58, %v585_v51 }
  0xea   :  { %3050 = vst [vmem:[#allocation34_spill] sm:$0xff] %v2690_v12  ;;  %v606_v17 = vadd.f32 %v2146_v18, %v605_v3  ;;  %v595_v3 = vor.u32 1.1754944e-38, %v594_v38 }
  0xec   :  { %v228_v23 = vpop.f32.mrf.mxu2  ;;  %v610_v51 = vsel %vm609_vm6, %v2146_v18, %v606_v17 }
  0xed   :  { %v615_v37 = vsel %vm612_vm9, %v614_v43, %v610_v51 }
  0xef   :  { %v261_v26 = vpop.f32.mrf.mxu3 }
  0xf0   :  { %v587_v26 = vadd.f32 %v2148_v58, %v586_v9 }
  0xf2   :  { %v591_v45 = vsel %vm590_vm8, %v2148_v58, %v587_v26 }
  0xf4   :  { %v562_v12 = vpop.f32.mrf.mxu2 }
  0xf5   :  { %v563_v10 = vadd.f32 %v562_v12, %v322_v8  ;;  %v596_v8 = vsel %vm593_vm10, %v595_v3, %v591_v45  ;;  %v143_v45 = vadd.f32 %v2600_v21, %v2590_v11  ;;  %v176_v3 = vadd.f32 %v2602_v22, %v2592_v13 }
  0xf7   :  { %v575_v23 = vpop.f32.mrf.mxu3  ;;  %2149 = vtanh.f32 %v563_v10 }
  0xf8   :  { %v576_v29 = vadd.f32 %v575_v23, %v240_v30  ;;  %v637_v30 = vmul.f32 0.0, %v615_v37 }
  0xfa   :  { %v1991_v57 = vmul.f32 -1.442695, %v576_v29 }
  0xfc   :  { %2151 = vpow2.f32 %v1991_v57  ;;  %v564_v12 = vpop.f32.mrf.mxu2 }
  0xfd   :  { %v2150_v9 = vpop.eup %2149 }
  0xfe   :  { %v638_v23 = vmul.f32 %v2150_v9, %v596_v8 }
  0xff   :  { %v577_v46 = vpop.f32.mrf.mxu3 }
 0x100   :  { %v2696_v10 = vadd.f32 %v638_v23, %v637_v30  ;;  %v242_v23 = vadd.f32 %v2620_v50, %v2630_v1  ;;  %v209_v50 = vadd.f32 %v2618_v47, %v2628_v60 }
 0x102   :  { %v2152_v33 = vpop.eup %2151 }
 0x103   :  { %v621_v2 = vadd.f32 1.0, %v2152_v33 }
 0x105   :  { %2153 = vrcp.f32 %v621_v2  ;;  %v633_v58 = vand.u32 2147483648, %v621_v2  ;;  %v631_v26 = vand.u32 2147483647, %v621_v2  ;;  %vm627_vm12 = vweird.f32 %v621_v2 }
 0x106   :  { %2155 = vtanh.f32 %v2696_v10 }
 0x107   :  { %v634_v29 = vor.u32 1.1754944e-38, %v633_v58  ;;  %vm632_vm14 = vcmp.eq.f32.partialorder %v631_v26, 8.507059e+37 }
 0x10b   :  { %v2154_v17 = vpop.eup %2153 }
 0x10c   :  { %v623_v18 = vmul.f32 %v2154_v17, %v621_v2  ;;  %vm628_vm11 = vweird.f32 %v2154_v17  ;;  %v2156_v51 = vpop.eup %2155 }
 0x10d   :  { %vm629_vm13 = vmor %vm627_vm12, %vm628_vm11 }
 0x10e   :  { %v624_v59 = vsub.f32 1.0, %v623_v18 }
 0x110   :  { %v625_v38 = vmul.f32 %v2154_v17, %v624_v59 }
 0x112   :  { %v626_v20 = vadd.f32 %v2154_v17, %v625_v38 }
 0x114   :  { %v630_v39 = vsel %vm629_vm13, %v2154_v17, %v626_v20 }
 0x115   :  { %v635_v57 = vsel %vm632_vm14, %v634_v29, %v630_v39 }
 0x116   :  { %v641_v43 = vmul.f32 %v2156_v51, %v635_v57 }
 0x118   :  { %v642_v33 = vpack.c.bf16 %v641_v43, %v641_v43 }
 0x11a   :  { %658 = vmatmul.bf16.vlgmr.msra.gmra.mxu0 %v642_v33  ;;  %671 = vmatmul.bf16.vlgmr.msra.gmra.mxu1 %v642_v33 }
 0x11b   :  { %684 = vmatmul.bf16.vlgmr.msrb.gmra.mxu2 %v642_v33  ;;  %697 = vmatmul.bf16.vlgmr.msrb.gmra.mxu3 %v642_v33 }
 0x11c   :  { %896 = vmatpush.bf16.msra.mxu0 %v2394_v31  ;;  %909 = vmatpush.bf16.msra.mxu1 %v2396_v32 }
 0x11d   :  { %922 = vmatpush.bf16.msrb.mxu2 %v2392_v28  ;;  %935 = vmatpush.bf16.msrb.mxu3 %v2390_v27 }
 0x120   :  { %897 = vmatpush.bf16.msra.mxu0 %v2412_v40  ;;  %910 = vmatpush.bf16.msra.mxu1 %v2414_v41 }
 0x121   :  { %923 = vmatpush.bf16.msrb.mxu2 %v2416_v42  ;;  %936 = vmatpush.bf16.msrb.mxu3 %v2408_v36 }
 0x124   :  { %898 = vmatpush.bf16.msra.mxu0 %v2424_v52  ;;  %911 = vmatpush.bf16.msra.mxu1 %v2426_v53 }
 0x125   :  { %924 = vmatpush.bf16.msrb.mxu2 %v2428_v55  ;;  %937 = vmatpush.bf16.msrb.mxu3 %v2420_v49 }
 0x128   :  { %899 = vmatpush.bf16.msra.mxu0 %v2436_v62  ;;  %912 = vmatpush.bf16.msra.mxu1 %v2438_v63 }
 0x129   :  { %925 = vmatpush.bf16.msrb.mxu2 %v2462_v16  ;;  %938 = vmatpush.bf16.msrb.mxu3 %v2432_v61 }
 0x12c   :  { %900 = vmatpush.bf16.msra.mxu0 %v2449_v4  ;;  %913 = vmatpush.bf16.msra.mxu1 %v2454_v6 }
 0x12d   :  { %926 = vmatpush.bf16.msrb.mxu2 %v2489_v44  ;;  %939 = vmatpush.bf16.msrb.mxu3 %v2464_v19 }
 0x130   :  { %901 = vmatpush.bf16.msra.mxu0 %v2458_v14  ;;  %914 = vmatpush.bf16.msra.mxu1 %v2460_v15 }
 0x131   :  { %927 = vmatpush.bf16.msrb.mxu2 %v2496_v54  ;;  %940 = vmatpush.bf16.msrb.mxu3 %v2493_v48 }
 0x134   :  { %902 = vmatpush.bf16.msra.mxu0 %v2470_v24  ;;  %915 = vmatpush.bf16.msra.mxu1 %v2472_v25 }
 0x135   :  { %928 = vmatpush.bf16.msrb.mxu2 %v2516_v0  ;;  %941 = vmatpush.bf16.msrb.mxu3 %v2499_v56 }
 0x138   :  { %903 = vmatpush.bf16.msra.mxu0 %v2476_v34  ;;  %916 = vmatpush.bf16.msra.mxu1 %v2478_v35 }
 0x139   :  { %929 = vmatpush.bf16.msrb.mxu2 %v2523_v7  ;;  %942 = vmatpush.bf16.msrb.mxu3 %v2520_v5 }
 0x197   :  { %v659_v37 = vpop.f32.mrf.mxu0  ;;  %v672_v12 = vpop.f32.mrf.mxu1 }
 0x198   :  { %v660_v9 = vadd.f32 %v659_v37, %v143_v45  ;;  %v673_v8 = vadd.f32 %v672_v12, %v176_v3 }
 0x19a   :  { %v1992_v46 = vmul.f32 -1.442695, %v660_v9  ;;  %v1993_v30 = vmul.f32 -1.442695, %v673_v8 }
 0x19c   :  { %2157 = vpow2.f32 %v1992_v46 }
 0x19d   :  { %2159 = vpow2.f32 %v1993_v30 }
 0x19e   :  { %v685_v2 = vpop.f32.mrf.mxu2  ;;  %v698_v17 = vpop.f32.mrf.mxu3 }
 0x19f   :  { %v699_v18 = vadd.f32 %v698_v17, %v242_v23  ;;  %v661_v59 = vpop.f32.mrf.mxu0  ;;  %v674_v58 = vpop.f32.mrf.mxu1  ;;  %v686_v33 = vadd.f32 %v685_v2, %v209_v50 }
 0x1a1   :  { %v1994_v21 = vmul.f32 -1.442695, %v699_v18 }
 0x1a2   :  { %v2158_v38 = vpop.eup %2157 }
 0x1a3   :  { %v2160_v26 = vpop.eup %2159  ;;  %v705_v22 = vadd.f32 1.0, %v2158_v38  ;;  %2161 = vpow2.f32 %v1994_v21 }
 0x1a4   :  { %v724_v20 = vadd.f32 1.0, %v2160_v26 }
 0x1a5   :  { %2163 = vrcp.f32 %v705_v22  ;;  %v717_v8 = vand.u32 2147483648, %v705_v22  ;;  %v715_v23 = vand.u32 2147483647, %v705_v22  ;;  %vm711_vm1 = vweird.f32 %v705_v22 }
 0x1a6   :  { %2165 = vrcp.f32 %v724_v20  ;;  %v687_v29 = vpop.f32.mrf.mxu2  ;;  %v700_v39 = vpop.f32.mrf.mxu3  ;;  %v736_v46 = vand.u32 2147483648, %v724_v20  ;;  %v734_v18 = vand.u32 2147483647, %v724_v20  ;;  %vm730_vm2 = vweird.f32 %v724_v20 }
 0x1a7   :  { %v718_v2 = vor.u32 1.1754944e-38, %v717_v8  ;;  %vm716_vm5 = vcmp.eq.f32.partialorder %v715_v23, 8.507059e+37 }
 0x1a8   :  { %v737_v38 = vor.u32 1.1754944e-38, %v736_v46  ;;  %vm735_vm6 = vcmp.eq.f32.partialorder %v734_v18, 8.507059e+37  ;;  %v3051_v18 = vld [vmem:[#allocation9_spill] sm:$0xff] }
 0x1a9   :  { %v2162_v51 = vpop.eup %2161 }
 0x1aa   :  { %v744_v57 = vadd.f32 1.0, %v2162_v51 }
 0x1ab   :  { %v2164_v43 = vpop.eup %2163 }
 0x1ac   :  { %v2166_v45 = vpop.eup %2165  ;;  %v707_v3 = vmul.f32 %v2164_v43, %v705_v22  ;;  %2167 = vrcp.f32 %v744_v57  ;;  %vm712_vm15 = vweird.f32 %v2164_v43  ;;  %vm750_vm8 = vweird.f32 %v744_v57 }
 0x1ad   :  { %v726_v37 = vmul.f32 %v2166_v45, %v724_v20  ;;  %2169 = vtanh.f32 %v686_v33  ;;  %vm731_vm0 = vweird.f32 %v2166_v45  ;;  %vm713_vm3 = vmor %vm711_vm1, %vm712_vm15 }
 0x1ae   :  { %v708_v12 = vsub.f32 1.0, %v707_v3  ;;  %vm732_vm4 = vmor %vm730_vm2, %vm731_vm0 }
 0x1af   :  { %v727_v9 = vsub.f32 1.0, %v726_v37 }
 0x1b0   :  { %v709_v30 = vmul.f32 %v2164_v43, %v708_v12 }
 0x1b1   :  { %v728_v17 = vmul.f32 %v2166_v45, %v727_v9  ;;  %v756_v9 = vand.u32 2147483648, %v744_v57 }
 0x1b2   :  { %v2168_v59 = vpop.eup %2167  ;;  %v710_v47 = vadd.f32 %v2164_v43, %v709_v30 }
 0x1b3   :  { %v729_v58 = vadd.f32 %v2166_v45, %v728_v17  ;;  %v746_v21 = vmul.f32 %v2168_v59, %v744_v57  ;;  %v2170_v29 = vpop.eup %2169  ;;  %vm751_vm7 = vweird.f32 %v2168_v59  ;;  %v757_v46 = vor.u32 1.1754944e-38, %v756_v9 }
 0x1b4   :  { %v714_v26 = vsel %vm713_vm3, %v2164_v43, %v710_v47  ;;  %v754_v43 = vand.u32 2147483647, %v744_v57  ;;  %vm752_vm9 = vmor %vm750_vm8, %vm751_vm7  ;;  %v3052_v47 = vld [vmem:[#allocation10_spill] sm:$0xff] }
 0x1b5   :  { %v719_v39 = vsel %vm716_vm5, %v718_v2, %v714_v26  ;;  %v733_v51 = vsel %vm732_vm4, %v2166_v45, %v729_v58  ;;  %v747_v50 = vsub.f32 1.0, %v746_v21 }
 0x1b6   :  { %v738_v33 = vsel %vm735_vm6, %v737_v38, %v733_v51  ;;  %v761_v3 = vmul.f32 %v2170_v29, %v719_v39  ;;  %vm755_vm10 = vcmp.eq.f32.partialorder %v754_v43, 8.507059e+37  ;;  %v3053_v29 = vld [vmem:[#allocation16_spill] sm:$0xff] }
 0x1b7   :  { %v760_v37 = vmul.f32 %v738_v33, %v2696_v10  ;;  %v748_v12 = vmul.f32 %v2168_v59, %v747_v50 }
 0x1b9   :  { %v2740_v22 = vadd.f32 %v761_v3, %v760_v37  ;;  %v749_v20 = vadd.f32 %v2168_v59, %v748_v12 }
 0x1bb   :  { %2171 = vtanh.f32 %v2740_v22  ;;  %v753_v8 = vsel %vm752_vm9, %v2168_v59, %v749_v20 }
 0x1bc   :  { %v758_v30 = vsel %vm755_vm10, %v757_v46, %v753_v8 }
 0x1c1   :  { %v2172_v45 = vpop.eup %2171 }
 0x1c2   :  { %v764_v23 = vmul.f32 %v2172_v45, %v758_v30  ;;  %v3054_v30 = vld [vmem:[#allocation15_spill] sm:$0xff] }
 0x1c4   :  { %v765_v17 = vpack.c.bf16 %v764_v23, %v764_v23 }
 0x1c6   :  { %781 = vmatmul.bf16.vlgmr.msrb.gmra.mxu0 %v765_v17  ;;  %794 = vmatmul.bf16.vlgmr.msrb.gmra.mxu1 %v765_v17 }
 0x1c7   :  { %807 = vmatmul.bf16.vlgmr.msra.gmra.mxu2 %v765_v17  ;;  %820 = vmatmul.bf16.vlgmr.msra.gmra.mxu3 %v765_v17 }
 0x1c8   :  { %1019 = vmatpush.bf16.msrb.mxu0 %v2394_v31  ;;  %1032 = vmatpush.bf16.msrb.mxu1 %v2396_v32 }
 0x1c9   :  { %1045 = vmatpush.bf16.msra.mxu2 %v2392_v28  ;;  %1058 = vmatpush.bf16.msra.mxu3 %v2390_v27 }
 0x1cc   :  { %1020 = vmatpush.bf16.msrb.mxu0 %v2412_v40  ;;  %1033 = vmatpush.bf16.msrb.mxu1 %v2414_v41 }
 0x1cd   :  { %1046 = vmatpush.bf16.msra.mxu2 %v2416_v42  ;;  %1059 = vmatpush.bf16.msra.mxu3 %v2408_v36 }
 0x1d0   :  { %1021 = vmatpush.bf16.msrb.mxu0 %v2424_v52  ;;  %1034 = vmatpush.bf16.msrb.mxu1 %v2426_v53 }
 0x1d1   :  { %1047 = vmatpush.bf16.msra.mxu2 %v2428_v55  ;;  %1060 = vmatpush.bf16.msra.mxu3 %v2420_v49 }
 0x1d4   :  { %1022 = vmatpush.bf16.msrb.mxu0 %v2436_v62  ;;  %1035 = vmatpush.bf16.msrb.mxu1 %v2438_v63 }
 0x1d5   :  { %1048 = vmatpush.bf16.msra.mxu2 %v2462_v16  ;;  %1061 = vmatpush.bf16.msra.mxu3 %v2432_v61 }
 0x1d8   :  { %1023 = vmatpush.bf16.msrb.mxu0 %v2449_v4  ;;  %1036 = vmatpush.bf16.msrb.mxu1 %v2454_v6 }
 0x1d9   :  { %1049 = vmatpush.bf16.msra.mxu2 %v2489_v44  ;;  %1062 = vmatpush.bf16.msra.mxu3 %v2464_v19 }
 0x1dc   :  { %1024 = vmatpush.bf16.msrb.mxu0 %v2458_v14  ;;  %1037 = vmatpush.bf16.msrb.mxu1 %v2460_v15 }
 0x1dd   :  { %1050 = vmatpush.bf16.msra.mxu2 %v2496_v54  ;;  %1063 = vmatpush.bf16.msra.mxu3 %v2493_v48 }
 0x1e0   :  { %1025 = vmatpush.bf16.msrb.mxu0 %v2470_v24  ;;  %1038 = vmatpush.bf16.msrb.mxu1 %v2472_v25 }
 0x1e1   :  { %1051 = vmatpush.bf16.msra.mxu2 %v2516_v0  ;;  %1064 = vmatpush.bf16.msra.mxu3 %v2499_v56 }
 0x1e4   :  { %1026 = vmatpush.bf16.msrb.mxu0 %v2476_v34  ;;  %1039 = vmatpush.bf16.msrb.mxu1 %v2478_v35 }
 0x1e5   :  { %1052 = vmatpush.bf16.msra.mxu2 %v2523_v7  ;;  %1065 = vmatpush.bf16.msra.mxu3 %v2520_v5 }
 0x243   :  { %v782_v10 = vpop.f32.mrf.mxu0  ;;  %v795_v57 = vpop.f32.mrf.mxu1 }
 0x244   :  { %v783_v59 = vadd.f32 %v782_v10, %v3051_v18  ;;  %v796_v2 = vadd.f32 %v795_v57, %v3052_v47 }
 0x246   :  { %v1995_v58 = vmul.f32 -1.442695, %v783_v59  ;;  %v1996_v21 = vmul.f32 -1.442695, %v796_v2 }
 0x248   :  { %2173 = vpow2.f32 %v1995_v58 }
 0x249   :  { %2175 = vpow2.f32 %v1996_v21 }
 0x24a   :  { %v808_v38 = vpop.f32.mrf.mxu2  ;;  %v821_v26 = vpop.f32.mrf.mxu3 }
 0x24b   :  { %v822_v39 = vadd.f32 %v821_v26, %v3053_v29  ;;  %v784_v51 = vpop.f32.mrf.mxu0  ;;  %v797_v50 = vpop.f32.mrf.mxu1  ;;  %v809_v23 = vadd.f32 %v808_v38, %v3054_v30 }
 0x24d   :  { %v1997_v33 = vmul.f32 -1.442695, %v822_v39 }
 0x24e   :  { %v2174_v3 = vpop.eup %2173 }
 0x24f   :  { %v2176_v37 = vpop.eup %2175  ;;  %v828_v12 = vadd.f32 1.0, %v2174_v3  ;;  %2177 = vpow2.f32 %v1997_v33 }
 0x250   :  { %v847_v20 = vadd.f32 1.0, %v2176_v37 }
 0x251   :  { %2179 = vrcp.f32 %v828_v12  ;;  %v840_v47 = vand.u32 2147483648, %v828_v12  ;;  %v838_v21 = vand.u32 2147483647, %v828_v12  ;;  %vm834_vm13 = vweird.f32 %v828_v12 }
 0x252   :  { %2181 = vrcp.f32 %v847_v20  ;;  %v810_v9 = vpop.f32.mrf.mxu2  ;;  %v823_v43 = vpop.f32.mrf.mxu3  ;;  %v859_v2 = vand.u32 2147483648, %v847_v20  ;;  %v857_v29 = vand.u32 2147483647, %v847_v20  ;;  %vm853_vm14 = vweird.f32 %v847_v20 }
 0x253   :  { %v841_v38 = vor.u32 1.1754944e-38, %v840_v47  ;;  %vm839_vm1 = vcmp.eq.f32.partialorder %v838_v21, 8.507059e+37 }
 0x254   :  { %v860_v3 = vor.u32 1.1754944e-38, %v859_v2  ;;  %vm858_vm2 = vcmp.eq.f32.partialorder %v857_v29, 8.507059e+37  ;;  %v3056_v29 = vld [vmem:[#allocation12_spill] sm:$0xff] }
 0x255   :  { %v2178_v8 = vpop.eup %2177 }
 0x256   :  { %v867_v46 = vadd.f32 1.0, %v2178_v8 }
 0x257   :  { %v2180_v45 = vpop.eup %2179 }
 0x258   :  { %v2182_v17 = vpop.eup %2181  ;;  %v830_v10 = vmul.f32 %v2180_v45, %v828_v12  ;;  %2183 = vrcp.f32 %v867_v46  ;;  %vm835_vm11 = vweird.f32 %v2180_v45  ;;  %vm873_vm4 = vweird.f32 %v867_v46 }
 0x259   :  { %v849_v57 = vmul.f32 %v2182_v17, %v847_v20  ;;  %2185 = vtanh.f32 %v809_v23  ;;  %vm854_vm12 = vweird.f32 %v2182_v17  ;;  %vm836_vm15 = vmor %vm834_vm13, %vm835_vm11 }
 0x25a   :  { %v831_v18 = vsub.f32 1.0, %v830_v10  ;;  %vm855_vm0 = vmor %vm853_vm14, %vm854_vm12 }
 0x25b   :  { %v850_v59 = vsub.f32 1.0, %v849_v57 }
 0x25c   :  { %v832_v58 = vmul.f32 %v2180_v45, %v831_v18 }
 0x25d   :  { %v851_v26 = vmul.f32 %v2182_v17, %v850_v59  ;;  %v879_v59 = vand.u32 2147483648, %v867_v46 }
 0x25e   :  { %v2184_v39 = vpop.eup %2183  ;;  %v833_v51 = vadd.f32 %v2180_v45, %v832_v58 }
 0x25f   :  { %v852_v50 = vadd.f32 %v2182_v17, %v851_v26  ;;  %v869_v33 = vmul.f32 %v2184_v39, %v867_v46  ;;  %v2186_v9 = vpop.eup %2185  ;;  %vm874_vm3 = vweird.f32 %v2184_v39  ;;  %v880_v2 = vor.u32 1.1754944e-38, %v879_v59 }
 0x260   :  { %v837_v37 = vsel %vm836_vm15, %v2180_v45, %v833_v51  ;;  %v877_v45 = vand.u32 2147483647, %v867_v46  ;;  %vm875_vm5 = vmor %vm873_vm4, %vm874_vm3 }
 0x261   :  { %v842_v43 = vsel %vm839_vm1, %v841_v38, %v837_v37  ;;  %v856_v8 = vsel %vm855_vm0, %v2182_v17, %v852_v50  ;;  %v870_v30 = vsub.f32 1.0, %v869_v33 }
 0x262   :  { %v861_v23 = vsel %vm858_vm2, %v860_v3, %v856_v8  ;;  %v884_v10 = vmul.f32 %v2186_v9, %v842_v43  ;;  %vm878_vm6 = vcmp.eq.f32.partialorder %v877_v45, 8.507059e+37  ;;  %v3057_v9 = vld [vmem:[#allocation20_spill] sm:$0xff] }
 0x263   :  { %v883_v57 = vmul.f32 %v861_v23, %v2740_v22  ;;  %v871_v18 = vmul.f32 %v2184_v39, %v870_v30  ;;  %v3055_v22 = vld [vmem:[#allocation11_spill] sm:$0xff]  ;;  %v247_v43 = vadd.f32 %v3057_v9, %v2630_v1 }
 0x264   :  { %v148_v46 = vadd.f32 %v3055_v22, %v2590_v11 }
 0x265   :  { %v2780_v12 = vadd.f32 %v884_v10, %v883_v57  ;;  %v872_v20 = vadd.f32 %v2184_v39, %v871_v18 }
 0x267   :  { %2187 = vtanh.f32 %v2780_v12  ;;  %v876_v47 = vsel %vm875_vm5, %v2184_v39, %v872_v20  ;;  %v181_v39 = vadd.f32 %v3056_v29, %v2592_v13 }
 0x268   :  { %v881_v58 = vsel %vm878_vm6, %v880_v2, %v876_v47 }
 0x26d   :  { %v2188_v17 = vpop.eup %2187 }
 0x26e   :  { %v887_v21 = vmul.f32 %v2188_v17, %v881_v58  ;;  %v3058_v17 = vld [vmem:[#allocation19_spill] sm:$0xff] }
 0x26f   :  { %v214_v1 = vadd.f32 %v3058_v17, %v2628_v60 }
 0x270   :  { %v888_v26 = vpack.c.bf16 %v887_v21, %v887_v21 }
 0x272   :  { %904 = vmatmul.bf16.vlgmr.msra.gmra.mxu0 %v888_v26  ;;  %917 = vmatmul.bf16.vlgmr.msra.gmra.mxu1 %v888_v26 }
 0x273   :  { %930 = vmatmul.bf16.vlgmr.msrb.gmra.mxu2 %v888_v26  ;;  %943 = vmatmul.bf16.vlgmr.msrb.gmra.mxu3 %v888_v26 }
 0x274   :  { %1142 = vmatpush.bf16.msra.mxu0 %v2394_v31  ;;  %1155 = vmatpush.bf16.msra.mxu1 %v2396_v32 }
 0x275   :  { %1168 = vmatpush.bf16.msrb.mxu2 %v2392_v28  ;;  %1181 = vmatpush.bf16.msrb.mxu3 %v2390_v27 }
 0x278   :  { %1143 = vmatpush.bf16.msra.mxu0 %v2412_v40  ;;  %1156 = vmatpush.bf16.msra.mxu1 %v2414_v41 }
 0x279   :  { %1169 = vmatpush.bf16.msrb.mxu2 %v2416_v42  ;;  %1182 = vmatpush.bf16.msrb.mxu3 %v2408_v36 }
 0x27c   :  { %1144 = vmatpush.bf16.msra.mxu0 %v2424_v52  ;;  %1157 = vmatpush.bf16.msra.mxu1 %v2426_v53 }
 0x27d   :  { %1170 = vmatpush.bf16.msrb.mxu2 %v2428_v55  ;;  %1183 = vmatpush.bf16.msrb.mxu3 %v2420_v49 }
 0x280   :  { %1145 = vmatpush.bf16.msra.mxu0 %v2436_v62  ;;  %1158 = vmatpush.bf16.msra.mxu1 %v2438_v63 }
 0x281   :  { %1171 = vmatpush.bf16.msrb.mxu2 %v2462_v16  ;;  %1184 = vmatpush.bf16.msrb.mxu3 %v2432_v61 }
 0x284   :  { %1146 = vmatpush.bf16.msra.mxu0 %v2449_v4  ;;  %1159 = vmatpush.bf16.msra.mxu1 %v2454_v6 }
 0x285   :  { %1172 = vmatpush.bf16.msrb.mxu2 %v2489_v44  ;;  %1185 = vmatpush.bf16.msrb.mxu3 %v2464_v19 }
 0x288   :  { %1147 = vmatpush.bf16.msra.mxu0 %v2458_v14  ;;  %1160 = vmatpush.bf16.msra.mxu1 %v2460_v15 }
 0x289   :  { %1173 = vmatpush.bf16.msrb.mxu2 %v2496_v54  ;;  %1186 = vmatpush.bf16.msrb.mxu3 %v2493_v48 }
 0x28c   :  { %1148 = vmatpush.bf16.msra.mxu0 %v2470_v24  ;;  %1161 = vmatpush.bf16.msra.mxu1 %v2472_v25 }
 0x28d   :  { %1174 = vmatpush.bf16.msrb.mxu2 %v2516_v0  ;;  %1187 = vmatpush.bf16.msrb.mxu3 %v2499_v56 }
 0x290   :  { %1149 = vmatpush.bf16.msra.mxu0 %v2476_v34  ;;  %1162 = vmatpush.bf16.msra.mxu1 %v2478_v35 }
 0x291   :  { %1175 = vmatpush.bf16.msrb.mxu2 %v2523_v7  ;;  %1188 = vmatpush.bf16.msrb.mxu3 %v2520_v5 }
 0x2ef   :  { %v905_v51 = vpop.f32.mrf.mxu0  ;;  %v918_v38 = vpop.f32.mrf.mxu1 }
 0x2f0   :  { %v906_v50 = vadd.f32 %v905_v51, %v148_v46  ;;  %v919_v33 = vadd.f32 %v918_v38, %v181_v39 }
 0x2f2   :  { %v1998_v3 = vmul.f32 -1.442695, %v906_v50  ;;  %v1999_v37 = vmul.f32 -1.442695, %v919_v33 }
 0x2f4   :  { %2189 = vpow2.f32 %v1998_v3 }
 0x2f5   :  { %2191 = vpow2.f32 %v1999_v37 }
 0x2f6   :  { %v931_v8 = vpop.f32.mrf.mxu2  ;;  %v944_v30 = vpop.f32.mrf.mxu3 }
 0x2f7   :  { %v945_v23 = vadd.f32 %v944_v30, %v247_v43  ;;  %v907_v10 = vpop.f32.mrf.mxu0  ;;  %v920_v57 = vpop.f32.mrf.mxu1  ;;  %v932_v26 = vadd.f32 %v931_v8, %v214_v1 }
 0x2f9   :  { %v2000_v11 = vmul.f32 -1.442695, %v945_v23 }
 0x2fa   :  { %v2190_v18 = vpop.eup %2189 }
 0x2fb   :  { %v2192_v20 = vpop.eup %2191  ;;  %v951_v13 = vadd.f32 1.0, %v2190_v18  ;;  %2193 = vpow2.f32 %v2000_v11 }
 0x2fc   :  { %v970_v59 = vadd.f32 1.0, %v2192_v20 }
 0x2fd   :  { %2195 = vrcp.f32 %v951_v13  ;;  %v963_v38 = vand.u32 2147483648, %v951_v13  ;;  %v961_v3 = vand.u32 2147483647, %v951_v13  ;;  %vm957_vm9 = vweird.f32 %v951_v13 }
 0x2fe   :  { %2197 = vrcp.f32 %v970_v59  ;;  %v933_v45 = vpop.f32.mrf.mxu2  ;;  %v946_v47 = vpop.f32.mrf.mxu3  ;;  %v982_v50 = vand.u32 2147483648, %v970_v59  ;;  %v980_v9 = vand.u32 2147483647, %v970_v59  ;;  %vm976_vm10 = vweird.f32 %v970_v59 }
 0x2ff   :  { %v964_v8 = vor.u32 1.1754944e-38, %v963_v38  ;;  %vm962_vm13 = vcmp.eq.f32.partialorder %v961_v3, 8.507059e+37  ;;  %v3060_v3 = vld [vmem:[#allocation14_spill] sm:$0xff] }
 0x300   :  { %v983_v10 = vor.u32 1.1754944e-38, %v982_v50  ;;  %vm981_vm14 = vcmp.eq.f32.partialorder %v980_v9, 8.507059e+37  ;;  %v3059_v50 = vld [vmem:[#allocation13_spill] sm:$0xff] }
 0x301   :  { %v2194_v2 = vpop.eup %2193 }
 0x302   :  { %v990_v58 = vadd.f32 1.0, %v2194_v2 }
 0x303   :  { %v2196_v21 = vpop.eup %2195 }
 0x304   :  { %v2198_v22 = vpop.eup %2197  ;;  %v953_v46 = vmul.f32 %v2196_v21, %v951_v13  ;;  %2199 = vrcp.f32 %v990_v58  ;;  %vm958_vm7 = vweird.f32 %v2196_v21  ;;  %vm996_vm0 = vweird.f32 %v990_v58 }
 0x305   :  { %v972_v29 = vmul.f32 %v2198_v22, %v970_v59  ;;  %2201 = vtanh.f32 %v932_v26  ;;  %vm977_vm8 = vweird.f32 %v2198_v22  ;;  %vm959_vm11 = vmor %vm957_vm9, %vm958_vm7  ;;  %v1002_v26 = vand.u32 2147483648, %v990_v58 }
 0x306   :  { %v954_v39 = vsub.f32 1.0, %v953_v46  ;;  %vm978_vm12 = vmor %vm976_vm10, %vm977_vm8 }
 0x307   :  { %v973_v51 = vsub.f32 1.0, %v972_v29  ;;  %v1003_v29 = vor.u32 1.1754944e-38, %v1002_v26 }
 0x308   :  { %v955_v33 = vmul.f32 %v2196_v21, %v954_v39 }
 0x309   :  { %v974_v37 = vmul.f32 %v2198_v22, %v973_v51 }
 0x30a   :  { %v2200_v43 = vpop.eup %2199  ;;  %v956_v60 = vadd.f32 %v2196_v21, %v955_v33 }
 0x30b   :  { %v975_v30 = vadd.f32 %v2198_v22, %v974_v37  ;;  %v992_v23 = vmul.f32 %v2200_v43, %v990_v58  ;;  %v2202_v11 = vpop.eup %2201  ;;  %vm997_vm15 = vweird.f32 %v2200_v43 }
 0x30c   :  { %v960_v57 = vsel %vm959_vm11, %v2196_v21, %v956_v60  ;;  %v1000_v21 = vand.u32 2147483647, %v990_v58  ;;  %vm998_vm1 = vmor %vm996_vm0, %vm997_vm15 }
 0x30d   :  { %v965_v18 = vsel %vm962_vm13, %v964_v8, %v960_v57  ;;  %v979_v20 = vsel %vm978_vm12, %v2198_v22, %v975_v30  ;;  %v993_v45 = vsub.f32 1.0, %v992_v23  ;;  %v3061_v30 = vld [vmem:[#allocation24_spill] sm:$0xff] }
 0x30e   :  { %v984_v47 = vsel %vm981_vm14, %v983_v10, %v979_v20  ;;  %v1007_v2 = vmul.f32 %v2202_v11, %v965_v18  ;;  %vm1001_vm2 = vcmp.eq.f32.partialorder %v1000_v21, 8.507059e+37  ;;  %v3062_v21 = vld [vmem:[#allocation23_spill] sm:$0xff] }
 0x30f   :  { %v1006_v17 = vmul.f32 %v984_v47, %v2780_v12  ;;  %v994_v1 = vmul.f32 %v2200_v43, %v993_v45 }
 0x311   :  { %v2824_v13 = vadd.f32 %v1007_v2, %v1006_v17  ;;  %v995_v59 = vadd.f32 %v2200_v43, %v994_v1 }
 0x313   :  { %2203 = vtanh.f32 %v2824_v13  ;;  %v999_v46 = vsel %vm998_vm1, %v2200_v43, %v995_v59 }
 0x314   :  { %v1004_v39 = vsel %vm1001_vm2, %v1003_v29, %v999_v46 }
 0x319   :  { %v2204_v22 = vpop.eup %2203 }
 0x31a   :  { %v1010_v51 = vmul.f32 %v2204_v22, %v1004_v39 }
 0x31c   :  { %v1011_v38 = vpack.c.bf16 %v1010_v51, %v1010_v51 }
 0x31e   :  { %1027 = vmatmul.bf16.vlgmr.msrb.gmra.mxu0 %v1011_v38  ;;  %1040 = vmatmul.bf16.vlgmr.msrb.gmra.mxu1 %v1011_v38 }
 0x31f   :  { %1053 = vmatmul.bf16.vlgmr.msra.gmra.mxu2 %v1011_v38  ;;  %1066 = vmatmul.bf16.vlgmr.msra.gmra.mxu3 %v1011_v38 }
 0x320   :  { %1265 = vmatpush.bf16.msrb.mxu0 %v2394_v31  ;;  %1278 = vmatpush.bf16.msrb.mxu1 %v2396_v32 }
 0x321   :  { %1291 = vmatpush.bf16.msra.mxu2 %v2392_v28  ;;  %1304 = vmatpush.bf16.msra.mxu3 %v2390_v27 }
 0x324   :  { %1266 = vmatpush.bf16.msrb.mxu0 %v2412_v40  ;;  %1279 = vmatpush.bf16.msrb.mxu1 %v2414_v41 }
 0x325   :  { %1292 = vmatpush.bf16.msra.mxu2 %v2416_v42  ;;  %1305 = vmatpush.bf16.msra.mxu3 %v2408_v36 }
 0x328   :  { %1267 = vmatpush.bf16.msrb.mxu0 %v2424_v52  ;;  %1280 = vmatpush.bf16.msrb.mxu1 %v2426_v53 }
 0x329   :  { %1293 = vmatpush.bf16.msra.mxu2 %v2428_v55  ;;  %1306 = vmatpush.bf16.msra.mxu3 %v2420_v49 }
 0x32c   :  { %1268 = vmatpush.bf16.msrb.mxu0 %v2436_v62  ;;  %1281 = vmatpush.bf16.msrb.mxu1 %v2438_v63 }
 0x32d   :  { %1294 = vmatpush.bf16.msra.mxu2 %v2462_v16  ;;  %1307 = vmatpush.bf16.msra.mxu3 %v2432_v61 }
 0x330   :  { %1269 = vmatpush.bf16.msrb.mxu0 %v2449_v4  ;;  %1282 = vmatpush.bf16.msrb.mxu1 %v2454_v6 }
 0x331   :  { %1295 = vmatpush.bf16.msra.mxu2 %v2489_v44  ;;  %1308 = vmatpush.bf16.msra.mxu3 %v2464_v19 }
 0x334   :  { %1270 = vmatpush.bf16.msrb.mxu0 %v2458_v14  ;;  %1283 = vmatpush.bf16.msrb.mxu1 %v2460_v15 }
 0x335   :  { %1296 = vmatpush.bf16.msra.mxu2 %v2496_v54  ;;  %1309 = vmatpush.bf16.msra.mxu3 %v2493_v48 }
 0x338   :  { %1271 = vmatpush.bf16.msrb.mxu0 %v2470_v24  ;;  %1284 = vmatpush.bf16.msrb.mxu1 %v2472_v25 }
 0x339   :  { %1297 = vmatpush.bf16.msra.mxu2 %v2516_v0  ;;  %1310 = vmatpush.bf16.msra.mxu3 %v2499_v56 }
 0x33c   :  { %1272 = vmatpush.bf16.msrb.mxu0 %v2476_v34  ;;  %1285 = vmatpush.bf16.msrb.mxu1 %v2478_v35 }
 0x33d   :  { %1298 = vmatpush.bf16.msra.mxu2 %v2523_v7  ;;  %1311 = vmatpush.bf16.msra.mxu3 %v2520_v5 }
 0x39b   :  { %v1028_v12 = vpop.f32.mrf.mxu0  ;;  %v1041_v58 = vpop.f32.mrf.mxu1 }
 0x39c   :  { %v1029_v33 = vadd.f32 %v1028_v12, %v3059_v50  ;;  %v1042_v37 = vadd.f32 %v1041_v58, %v3060_v3 }
 0x39e   :  { %v2001_v9 = vmul.f32 -1.442695, %v1029_v33  ;;  %v2002_v43 = vmul.f32 -1.442695, %v1042_v37 }
 0x3a0   :  { %2205 = vpow2.f32 %v2001_v9 }
 0x3a1   :  { %2207 = vpow2.f32 %v2002_v43 }
 0x3a2   :  { %v1054_v60 = vpop.f32.mrf.mxu2  ;;  %v1067_v8 = vpop.f32.mrf.mxu3 }
 0x3a3   :  { %v1068_v23 = vadd.f32 %v1067_v8, %v3061_v30  ;;  %v1030_v10 = vpop.f32.mrf.mxu0  ;;  %v1043_v57 = vpop.f32.mrf.mxu1  ;;  %v1055_v46 = vadd.f32 %v1054_v60, %v3062_v21 }
 0x3a5   :  { %v2003_v11 = vmul.f32 -1.442695, %v1068_v23 }
 0x3a6   :  { %v2206_v18 = vpop.eup %2205 }
 0x3a7   :  { %v2208_v20 = vpop.eup %2207  ;;  %v1074_v45 = vadd.f32 1.0, %v2206_v18  ;;  %2209 = vpow2.f32 %v2003_v11 }
 0x3a8   :  { %v1093_v47 = vadd.f32 1.0, %v2208_v20 }
 0x3a9   :  { %2211 = vrcp.f32 %v1074_v45  ;;  %v1086_v12 = vand.u32 2147483648, %v1074_v45  ;;  %v1084_v33 = vand.u32 2147483647, %v1074_v45  ;;  %vm1080_vm5 = vweird.f32 %v1074_v45 }
 0x3aa   :  { %2213 = vrcp.f32 %v1093_v47  ;;  %v1056_v2 = vpop.f32.mrf.mxu2  ;;  %v1069_v17 = vpop.f32.mrf.mxu3  ;;  %v1105_v58 = vand.u32 2147483648, %v1093_v47  ;;  %v1103_v37 = vand.u32 2147483647, %v1093_v47  ;;  %vm1099_vm6 = vweird.f32 %v1093_v47 }
 0x3ab   :  { %v1087_v60 = vor.u32 1.1754944e-38, %v1086_v12  ;;  %vm1085_vm9 = vcmp.eq.f32.partialorder %v1084_v33, 8.507059e+37  ;;  %v3064_v33 = vld [vmem:[#allocation18_spill] sm:$0xff] }
 0x3ac   :  { %v1106_v23 = vor.u32 1.1754944e-38, %v1105_v58  ;;  %vm1104_vm10 = vcmp.eq.f32.partialorder %v1103_v37, 8.507059e+37  ;;  %v3063_v58 = vld [vmem:[#allocation17_spill] sm:$0xff] }
 0x3ad   :  { %v2210_v1 = vpop.eup %2209 }
 0x3ae   :  { %v1113_v59 = vadd.f32 1.0, %v2210_v1 }
 0x3af   :  { %v2212_v26 = vpop.eup %2211 }
 0x3b0   :  { %v2214_v29 = vpop.eup %2213  ;;  %v1076_v22 = vmul.f32 %v2212_v26, %v1074_v45  ;;  %2215 = vrcp.f32 %v1113_v59  ;;  %vm1081_vm3 = vweird.f32 %v2212_v26  ;;  %vm1119_vm12 = vweird.f32 %v1113_v59 }
 0x3b1   :  { %v1095_v39 = vmul.f32 %v2214_v29, %v1093_v47  ;;  %2217 = vtanh.f32 %v1055_v46  ;;  %vm1100_vm4 = vweird.f32 %v2214_v29  ;;  %vm1082_vm7 = vmor %vm1080_vm5, %vm1081_vm3  ;;  %v1125_v46 = vand.u32 2147483648, %v1113_v59 }
 0x3b2   :  { %v1077_v51 = vsub.f32 1.0, %v1076_v22  ;;  %vm1101_vm8 = vmor %vm1099_vm6, %vm1100_vm4 }
 0x3b3   :  { %v1096_v38 = vsub.f32 1.0, %v1095_v39  ;;  %v1126_v39 = vor.u32 1.1754944e-38, %v1125_v46 }
 0x3b4   :  { %v1078_v50 = vmul.f32 %v2212_v26, %v1077_v51 }
 0x3b5   :  { %v1097_v3 = vmul.f32 %v2214_v29, %v1096_v38 }
 0x3b6   :  { %v2216_v9 = vpop.eup %2215  ;;  %v1079_v43 = vadd.f32 %v2212_v26, %v1078_v50 }
 0x3b7   :  { %v1098_v8 = vadd.f32 %v2214_v29, %v1097_v3  ;;  %v1115_v30 = vmul.f32 %v2216_v9, %v1113_v59  ;;  %v2218_v57 = vpop.eup %2217  ;;  %vm1120_vm11 = vweird.f32 %v2216_v9 }
 0x3b8   :  { %v1083_v10 = vsel %vm1082_vm7, %v2212_v26, %v1079_v43  ;;  %v1123_v26 = vand.u32 2147483647, %v1113_v59  ;;  %vm1121_vm13 = vmor %vm1119_vm12, %vm1120_vm11 }
 0x3b9   :  { %v1088_v11 = vsel %vm1085_vm9, %v1087_v60, %v1083_v10  ;;  %v1102_v18 = vsel %vm1101_vm8, %v2214_v29, %v1098_v8  ;;  %v1116_v20 = vsub.f32 1.0, %v1115_v30  ;;  %v3065_v8 = vld [vmem:[#allocation28_spill] sm:$0xff] }
 0x3ba   :  { %v1107_v2 = vsel %vm1104_vm10, %v1106_v23, %v1102_v18  ;;  %v1130_v17 = vmul.f32 %v2218_v57, %v1088_v11  ;;  %vm1124_vm14 = vcmp.eq.f32.partialorder %v1123_v26, 8.507059e+37  ;;  %v3066_v26 = vld [vmem:[#allocation27_spill] sm:$0xff] }
 0x3bb   :  { %v1129_v1 = vmul.f32 %v1107_v2, %v2824_v13  ;;  %v1117_v21 = vmul.f32 %v2216_v9, %v1116_v20 }
 0x3bd   :  { %v2864_v45 = vadd.f32 %v1130_v17, %v1129_v1  ;;  %v1118_v47 = vadd.f32 %v2216_v9, %v1117_v21 }
 0x3bf   :  { %2219 = vtanh.f32 %v2864_v45  ;;  %v1122_v22 = vsel %vm1121_vm13, %v2216_v9, %v1118_v47 }
 0x3c0   :  { %v1127_v51 = vsel %vm1124_vm14, %v1126_v39, %v1122_v22 }
 0x3c5   :  { %v2220_v29 = vpop.eup %2219 }
 0x3c6   :  { %v1133_v38 = vmul.f32 %v2220_v29, %v1127_v51 }
 0x3c8   :  { %v1134_v12 = vpack.c.bf16 %v1133_v38, %v1133_v38 }
 0x3ca   :  { %1150 = vmatmul.bf16.vlgmr.msra.gmra.mxu0 %v1134_v12  ;;  %1163 = vmatmul.bf16.vlgmr.msra.gmra.mxu1 %v1134_v12 }
 0x3cb   :  { %1176 = vmatmul.bf16.vlgmr.msrb.gmra.mxu2 %v1134_v12  ;;  %1189 = vmatmul.bf16.vlgmr.msrb.gmra.mxu3 %v1134_v12 }
 0x3cc   :  { %1388 = vmatpush.bf16.msra.mxu0 %v2394_v31  ;;  %1401 = vmatpush.bf16.msra.mxu1 %v2396_v32 }
 0x3cd   :  { %1414 = vmatpush.bf16.msrb.mxu2 %v2392_v28  ;;  %1427 = vmatpush.bf16.msrb.mxu3 %v2390_v27 }
 0x3d0   :  { %1389 = vmatpush.bf16.msra.mxu0 %v2412_v40  ;;  %1402 = vmatpush.bf16.msra.mxu1 %v2414_v41 }
 0x3d1   :  { %1415 = vmatpush.bf16.msrb.mxu2 %v2416_v42  ;;  %1428 = vmatpush.bf16.msrb.mxu3 %v2408_v36 }
 0x3d4   :  { %1390 = vmatpush.bf16.msra.mxu0 %v2424_v52  ;;  %1403 = vmatpush.bf16.msra.mxu1 %v2426_v53 }
 0x3d5   :  { %1416 = vmatpush.bf16.msrb.mxu2 %v2428_v55  ;;  %1429 = vmatpush.bf16.msrb.mxu3 %v2420_v49 }
 0x3d8   :  { %1391 = vmatpush.bf16.msra.mxu0 %v2436_v62  ;;  %1404 = vmatpush.bf16.msra.mxu1 %v2438_v63 }
 0x3d9   :  { %1417 = vmatpush.bf16.msrb.mxu2 %v2462_v16  ;;  %1430 = vmatpush.bf16.msrb.mxu3 %v2432_v61 }
 0x3dc   :  { %1392 = vmatpush.bf16.msra.mxu0 %v2449_v4  ;;  %1405 = vmatpush.bf16.msra.mxu1 %v2454_v6 }
 0x3dd   :  { %1418 = vmatpush.bf16.msrb.mxu2 %v2489_v44  ;;  %1431 = vmatpush.bf16.msrb.mxu3 %v2464_v19 }
 0x3e0   :  { %1393 = vmatpush.bf16.msra.mxu0 %v2458_v14  ;;  %1406 = vmatpush.bf16.msra.mxu1 %v2460_v15 }
 0x3e1   :  { %1419 = vmatpush.bf16.msrb.mxu2 %v2496_v54  ;;  %1432 = vmatpush.bf16.msrb.mxu3 %v2493_v48 }
 0x3e4   :  { %1394 = vmatpush.bf16.msra.mxu0 %v2470_v24  ;;  %1407 = vmatpush.bf16.msra.mxu1 %v2472_v25 }
 0x3e5   :  { %1420 = vmatpush.bf16.msrb.mxu2 %v2516_v0  ;;  %1433 = vmatpush.bf16.msrb.mxu3 %v2499_v56 }
 0x3e8   :  { %1395 = vmatpush.bf16.msra.mxu0 %v2476_v34  ;;  %1408 = vmatpush.bf16.msra.mxu1 %v2478_v35 }
 0x3e9   :  { %1421 = vmatpush.bf16.msrb.mxu2 %v2523_v7  ;;  %1434 = vmatpush.bf16.msrb.mxu3 %v2520_v5 }
 0x447   :  { %v1151_v13 = vpop.f32.mrf.mxu0  ;;  %v1164_v59 = vpop.f32.mrf.mxu1 }
 0x448   :  { %v1152_v50 = vadd.f32 %v1151_v13, %v3063_v58  ;;  %v1165_v3 = vadd.f32 %v1164_v59, %v3064_v33 }
 0x44a   :  { %v2004_v37 = vmul.f32 -1.442695, %v1152_v50  ;;  %v2005_v9 = vmul.f32 -1.442695, %v1165_v3 }
 0x44c   :  { %2221 = vpow2.f32 %v2004_v37 }
 0x44d   :  { %2223 = vpow2.f32 %v2005_v9 }
 0x44e   :  { %v1177_v43 = vpop.f32.mrf.mxu2  ;;  %v1190_v60 = vpop.f32.mrf.mxu3 }
 0x44f   :  { %v1191_v30 = vadd.f32 %v1190_v60, %v3065_v8  ;;  %v1153_v23 = vpop.f32.mrf.mxu0  ;;  %v1166_v10 = vpop.f32.mrf.mxu1  ;;  %v1178_v22 = vadd.f32 %v1177_v43, %v3066_v26 }
 0x451   :  { %v2006_v57 = vmul.f32 -1.442695, %v1191_v30 }
 0x452   :  { %v2222_v11 = vpop.eup %2221 }
 0x453   :  { %v2224_v18 = vpop.eup %2223  ;;  %v1197_v20 = vadd.f32 1.0, %v2222_v11  ;;  %2225 = vpow2.f32 %v2006_v57 }
 0x454   :  { %v1216_v2 = vadd.f32 1.0, %v2224_v18 }
 0x455   :  { %2227 = vrcp.f32 %v1197_v20  ;;  %v1209_v13 = vand.u32 2147483648, %v1197_v20  ;;  %v1207_v50 = vand.u32 2147483647, %v1197_v20  ;;  %vm1203_vm1 = vweird.f32 %v1197_v20 }
 0x456   :  { %2229 = vrcp.f32 %v1216_v2  ;;  %v1179_v17 = vpop.f32.mrf.mxu2  ;;  %v1192_v1 = vpop.f32.mrf.mxu3  ;;  %v1228_v59 = vand.u32 2147483648, %v1216_v2  ;;  %v1226_v3 = vand.u32 2147483647, %v1216_v2  ;;  %vm1222_vm2 = vweird.f32 %v1216_v2 }
 0x457   :  { %v1210_v43 = vor.u32 1.1754944e-38, %v1209_v13  ;;  %vm1208_vm5 = vcmp.eq.f32.partialorder %v1207_v50, 8.507059e+37 }
 0x458   :  { %v1229_v30 = vor.u32 1.1754944e-38, %v1228_v59  ;;  %vm1227_vm6 = vcmp.eq.f32.partialorder %v1226_v3, 8.507059e+37 }
 0x459   :  { %v2226_v21 = vpop.eup %2225 }
 0x45a   :  { %v1236_v47 = vadd.f32 1.0, %v2226_v21 }
 0x45b   :  { %v2228_v46 = vpop.eup %2227 }
 0x45c   :  { %v2230_v39 = vpop.eup %2229  ;;  %v1199_v29 = vmul.f32 %v2228_v46, %v1197_v20  ;;  %2231 = vrcp.f32 %v1236_v47  ;;  %vm1204_vm15 = vweird.f32 %v2228_v46  ;;  %vm1242_vm8 = vweird.f32 %v1236_v47 }
 0x45d   :  { %v1218_v51 = vmul.f32 %v2230_v39, %v1216_v2  ;;  %2233 = vtanh.f32 %v1178_v22  ;;  %vm1223_vm0 = vweird.f32 %v2230_v39  ;;  %vm1205_vm3 = vmor %vm1203_vm1, %vm1204_vm15  ;;  %v1248_v22 = vand.u32 2147483648, %v1236_v47 }
 0x45e   :  { %v1200_v38 = vsub.f32 1.0, %v1199_v29  ;;  %vm1224_vm4 = vmor %vm1222_vm2, %vm1223_vm0 }
 0x45f   :  { %v1219_v12 = vsub.f32 1.0, %v1218_v51  ;;  %v1249_v51 = vor.u32 1.1754944e-38, %v1248_v22 }
 0x460   :  { %v1201_v58 = vmul.f32 %v2228_v46, %v1200_v38 }
 0x461   :  { %v1220_v33 = vmul.f32 %v2230_v39, %v1219_v12 }
 0x462   :  { %v2232_v37 = vpop.eup %2231  ;;  %v1202_v9 = vadd.f32 %v2228_v46, %v1201_v58 }
 0x463   :  { %v1221_v60 = vadd.f32 %v2230_v39, %v1220_v33  ;;  %v1238_v8 = vmul.f32 %v2232_v37, %v1236_v47  ;;  %v2234_v10 = vpop.eup %2233  ;;  %vm1243_vm7 = vweird.f32 %v2232_v37 }
 0x464   :  { %v1206_v23 = vsel %vm1205_vm3, %v2228_v46, %v1202_v9  ;;  %v1246_v46 = vand.u32 2147483647, %v1236_v47  ;;  %vm1244_vm9 = vmor %vm1242_vm8, %vm1243_vm7 }
 0x465   :  { %v1211_v57 = vsel %vm1208_vm5, %v1210_v43, %v1206_v23  ;;  %v1225_v11 = vsel %vm1224_vm4, %v2230_v39, %v1221_v60  ;;  %v1239_v18 = vsub.f32 1.0, %v1238_v8 }
 0x466   :  { %v1230_v17 = vsel %vm1227_vm6, %v1229_v30, %v1225_v11  ;;  %v1253_v1 = vmul.f32 %v2234_v10, %v1211_v57  ;;  %vm1247_vm10 = vcmp.eq.f32.partialorder %v1246_v46, 8.507059e+37 }
 0x467   :  { %v1252_v21 = vmul.f32 %v1230_v17, %v2864_v45  ;;  %v1240_v26 = vmul.f32 %v2232_v37, %v1239_v18 }
 0x469   :  { %v2904_v20 = vadd.f32 %v1253_v1, %v1252_v21  ;;  %v1241_v2 = vadd.f32 %v2232_v37, %v1240_v26 }
 0x46b   :  { %2235 = vtanh.f32 %v2904_v20  ;;  %v1245_v29 = vsel %vm1244_vm9, %v2232_v37, %v1241_v2 }
 0x46c   :  { %v1250_v38 = vsel %vm1247_vm10, %v1249_v51, %v1245_v29 }
 0x471   :  { %v2236_v39 = vpop.eup %2235 }
 0x472   :  { %v1256_v12 = vmul.f32 %v2236_v39, %v1250_v38 }
 0x474   :  { %v1257_v13 = vpack.c.bf16 %v1256_v12, %v1256_v12 }
 0x476   :  { %1273 = vmatmul.bf16.vlgmr.msrb.gmra.mxu0 %v1257_v13  ;;  %1286 = vmatmul.bf16.vlgmr.msrb.gmra.mxu1 %v1257_v13 }
 0x477   :  { %1299 = vmatmul.bf16.vlgmr.msra.gmra.mxu2 %v1257_v13  ;;  %1312 = vmatmul.bf16.vlgmr.msra.gmra.mxu3 %v1257_v13 }
 0x478   :  { %1511 = vmatpush.bf16.msrb.mxu0 %v2394_v31  ;;  %1524 = vmatpush.bf16.msrb.mxu1 %v2396_v32  ;;  %v3067_v31 = vld [vmem:[#allocation21_spill] sm:$0xff] }
 0x479   :  { %1537 = vmatpush.bf16.msra.mxu2 %v2392_v28  ;;  %1550 = vmatpush.bf16.msra.mxu3 %v2390_v27 }
 0x47c   :  { %1512 = vmatpush.bf16.msrb.mxu0 %v2412_v40  ;;  %1525 = vmatpush.bf16.msrb.mxu1 %v2414_v41 }
 0x47d   :  { %1538 = vmatpush.bf16.msra.mxu2 %v2416_v42  ;;  %1551 = vmatpush.bf16.msra.mxu3 %v2408_v36  ;;  %v3068_v36 = vld [vmem:[#allocation22_spill] sm:$0xff] }
 0x480   :  { %1513 = vmatpush.bf16.msrb.mxu0 %v2424_v52  ;;  %1526 = vmatpush.bf16.msrb.mxu1 %v2426_v53  ;;  %v3069_v53 = vld [vmem:[#allocation30_spill] sm:$0xff] }
 0x481   :  { %1539 = vmatpush.bf16.msra.mxu2 %v2428_v55  ;;  %1552 = vmatpush.bf16.msra.mxu3 %v2420_v49 }
 0x484   :  { %1514 = vmatpush.bf16.msrb.mxu0 %v2436_v62  ;;  %1527 = vmatpush.bf16.msrb.mxu1 %v2438_v63 }
 0x485   :  { %1540 = vmatpush.bf16.msra.mxu2 %v2462_v16  ;;  %1553 = vmatpush.bf16.msra.mxu3 %v2432_v61 }
 0x488   :  { %1515 = vmatpush.bf16.msrb.mxu0 %v2449_v4  ;;  %1528 = vmatpush.bf16.msrb.mxu1 %v2454_v6 }
 0x489   :  { %1541 = vmatpush.bf16.msra.mxu2 %v2489_v44  ;;  %1554 = vmatpush.bf16.msra.mxu3 %v2464_v19 }
 0x48c   :  { %1516 = vmatpush.bf16.msrb.mxu0 %v2458_v14  ;;  %1529 = vmatpush.bf16.msrb.mxu1 %v2460_v15 }
 0x48d   :  { %1542 = vmatpush.bf16.msra.mxu2 %v2496_v54  ;;  %1555 = vmatpush.bf16.msra.mxu3 %v2493_v48 }
 0x490   :  { %1517 = vmatpush.bf16.msrb.mxu0 %v2470_v24  ;;  %1530 = vmatpush.bf16.msrb.mxu1 %v2472_v25 }
 0x491   :  { %1543 = vmatpush.bf16.msra.mxu2 %v2516_v0  ;;  %1556 = vmatpush.bf16.msra.mxu3 %v2499_v56 }
 0x494   :  { %1518 = vmatpush.bf16.msrb.mxu0 %v2476_v34  ;;  %1531 = vmatpush.bf16.msrb.mxu1 %v2478_v35  ;;  %v3070_v35 = vld [vmem:[#allocation29_spill] sm:$0xff] }
 0x495   :  { %1544 = vmatpush.bf16.msra.mxu2 %v2523_v7  ;;  %1557 = vmatpush.bf16.msra.mxu3 %v2520_v5 }
 0x4f3   :  { %v1274_v27 = vpop.f32.mrf.mxu0  ;;  %v1287_v28 = vpop.f32.mrf.mxu1 }
 0x4f4   :  { %v1275_v32 = vadd.f32 %v1274_v27, %v3067_v31  ;;  %v1288_v40 = vadd.f32 %v1287_v28, %v3068_v36  ;;  %v3071_v27 = vld [vmem:[#allocation25_spill] sm:$0xff]  ;;  %v3072_v31 = vld [vmem:[#allocation26_spill] sm:$0xff] }
 0x4f6   :  { %v2007_v41 = vmul.f32 -1.442695, %v1275_v32  ;;  %v2008_v42 = vmul.f32 -1.442695, %v1288_v40 }
 0x4f8   :  { %2237 = vpow2.f32 %v2007_v41 }
 0x4f9   :  { %2239 = vpow2.f32 %v2008_v42 }
 0x4fa   :  { %v1300_v49 = vpop.f32.mrf.mxu2  ;;  %v1313_v52 = vpop.f32.mrf.mxu3 }
 0x4fb   :  { %v1314_v55 = vadd.f32 %v1313_v52, %v3069_v53  ;;  %v1276_v61 = vpop.f32.mrf.mxu0  ;;  %v1289_v62 = vpop.f32.mrf.mxu1  ;;  %v1301_v44 = vadd.f32 %v1300_v49, %v3070_v35  ;;  %v3073_v49 = vld [vmem:[#allocation32_spill] sm:$0xff] }
 0x4fd   :  { %v2009_v63 = vmul.f32 -1.442695, %v1314_v55 }
 0x4fe   :  { %v2238_v4 = vpop.eup %2237 }
 0x4ff   :  { %v2240_v6 = vpop.eup %2239  ;;  %v1320_v14 = vadd.f32 1.0, %v2238_v4  ;;  %2241 = vpow2.f32 %v2009_v63 }
 0x500   :  { %v1339_v15 = vadd.f32 1.0, %v2240_v6 }
 0x501   :  { %2243 = vrcp.f32 %v1320_v14  ;;  %v1332_v7 = vand.u32 2147483648, %v1320_v14  ;;  %v1330_v59 = vand.u32 2147483647, %v1320_v14  ;;  %vm1326_vm13 = vweird.f32 %v1320_v14 }
 0x502   :  { %2245 = vrcp.f32 %v1339_v15  ;;  %v1302_v16 = vpop.f32.mrf.mxu2  ;;  %v1315_v19 = vpop.f32.mrf.mxu3  ;;  %v1351_v45 = vand.u32 2147483648, %v1339_v15  ;;  %v1349_v50 = vand.u32 2147483647, %v1339_v15  ;;  %vm1345_vm14 = vweird.f32 %v1339_v15 }
 0x503   :  { %v1333_v37 = vor.u32 1.1754944e-38, %v1332_v7  ;;  %vm1331_vm1 = vcmp.eq.f32.partialorder %v1330_v59, 8.507059e+37 }
 0x504   :  { %v1352_v60 = vor.u32 1.1754944e-38, %v1351_v45  ;;  %vm1350_vm2 = vcmp.eq.f32.partialorder %v1349_v50, 8.507059e+37 }
 0x505   :  { %v2242_v24 = vpop.eup %2241 }
 0x506   :  { %v1359_v25 = vadd.f32 1.0, %v2242_v24 }
 0x507   :  { %v2244_v34 = vpop.eup %2243 }
 0x508   :  { %v2246_v48 = vpop.eup %2245  ;;  %v1322_v54 = vmul.f32 %v2244_v34, %v1320_v14  ;;  %2247 = vrcp.f32 %v1359_v25  ;;  %vm1327_vm11 = vweird.f32 %v2244_v34  ;;  %v1371_v2 = vand.u32 2147483648, %v1359_v25 }
 0x509   :  { %v1341_v56 = vmul.f32 %v2246_v48, %v1339_v15  ;;  %2249 = vtanh.f32 %v1301_v44  ;;  %vm1346_vm12 = vweird.f32 %v2246_v48  ;;  %vm1328_vm15 = vmor %vm1326_vm13, %vm1327_vm11  ;;  %vm1365_vm4 = vweird.f32 %v1359_v25 }
 0x50a   :  { %v1323_v0 = vsub.f32 1.0, %v1322_v54  ;;  %vm1347_vm0 = vmor %vm1345_vm14, %vm1346_vm12  ;;  %v1369_v22 = vand.u32 2147483647, %v1359_v25  ;;  %v1372_v29 = vor.u32 1.1754944e-38, %v1371_v2 }
 0x50b   :  { %v1342_v5 = vsub.f32 1.0, %v1341_v56 }
 0x50c   :  { %v1324_v47 = vmul.f32 %v2244_v34, %v1323_v0  ;;  %vm1370_vm6 = vcmp.eq.f32.partialorder %v1369_v22, 8.507059e+37 }
 0x50d   :  { %v1343_v58 = vmul.f32 %v2246_v48, %v1342_v5 }
 0x50e   :  { %v2248_v33 = vpop.eup %2247  ;;  %v1325_v3 = vadd.f32 %v2244_v34, %v1324_v47 }
 0x50f   :  { %v1344_v9 = vadd.f32 %v2246_v48, %v1343_v58  ;;  %v1361_v43 = vmul.f32 %v2248_v33, %v1359_v25  ;;  %v2250_v30 = vpop.eup %2249  ;;  %vm1366_vm3 = vweird.f32 %v2248_v33  ;;  %v3074_v25 = vld [vmem:[#allocation31_spill] sm:$0xff] }
 0x510   :  { %v1329_v8 = vsel %vm1328_vm15, %v2244_v34, %v1325_v3  ;;  %vm1367_vm5 = vmor %vm1365_vm4, %vm1366_vm3 }
 0x511   :  { %v1334_v23 = vsel %vm1331_vm1, %v1333_v37, %v1329_v8  ;;  %v1348_v10 = vsel %vm1347_vm0, %v2246_v48, %v1344_v9  ;;  %v1362_v57 = vsub.f32 1.0, %v1361_v43 }
 0x512   :  { %v1353_v11 = vsel %vm1350_vm2, %v1352_v60, %v1348_v10  ;;  %v1376_v18 = vmul.f32 %v2250_v30, %v1334_v23 }
 0x513   :  { %v1375_v17 = vmul.f32 %v1353_v11, %v2904_v20  ;;  %v1363_v1 = vmul.f32 %v2248_v33, %v1362_v57 }
 0x515   :  { %v2944_v21 = vadd.f32 %v1376_v18, %v1375_v17  ;;  %v1364_v26 = vadd.f32 %v2248_v33, %v1363_v1 }
 0x517   :  { %2251 = vtanh.f32 %v2944_v21  ;;  %v1368_v46 = vsel %vm1367_vm5, %v2248_v33, %v1364_v26 }
 0x518   :  { %v1373_v39 = vsel %vm1370_vm6, %v1372_v29, %v1368_v46 }
 0x51d   :  { %v2252_v51 = vpop.eup %2251 }
 0x51e   :  { %v1379_v38 = vmul.f32 %v2252_v51, %v1373_v39 }
 0x520   :  { %v1380_v12 = vpack.c.bf16 %v1379_v38, %v1379_v38 }
 0x522   :  { %1396 = vmatmul.bf16.vlgmr.msra.gmra.mxu0 %v1380_v12  ;;  %1409 = vmatmul.bf16.vlgmr.msra.gmra.mxu1 %v1380_v12 }
 0x523   :  { %1422 = vmatmul.bf16.vlgmr.msrb.gmra.mxu2 %v1380_v12  ;;  %1435 = vmatmul.bf16.vlgmr.msrb.gmra.mxu3 %v1380_v12  ;;  %v2123_v12 = vld [vmem:[%s3018_s4 + $0x30] sm:$0xff] }
 0x59f   :  { %v1397_v20 = vpop.f32.mrf.mxu0  ;;  %v1410_v13 = vpop.f32.mrf.mxu1 }
 0x5a0   :  { %v1398_v28 = vadd.f32 %v1397_v20, %v3071_v27  ;;  %v1411_v32 = vadd.f32 %v1410_v13, %v3072_v31  ;;  %v2122_v20 = vld [vmem:[%s3018_s4 + $0x28] sm:$0xff]  ;;  %v2121_v13 = vld [vmem:[%s3018_s4 + $0x20] sm:$0xff]  ;;  %v2120_v27 = vld [vmem:[%s3018_s4 + $0x18] sm:$0xff] }
 0x5a2   :  { %v2010_v36 = vmul.f32 -1.442695, %v1398_v28  ;;  %v2011_v40 = vmul.f32 -1.442695, %v1411_v32  ;;  %v3075_v32 = vld [vmem:[#allocation7_spill] sm:$0xff] }
 0x5a4   :  { %2253 = vpow2.f32 %v2010_v36 }
 0x5a5   :  { %2255 = vpow2.f32 %v2011_v40  ;;  %v3076_v40 = vld [vmem:[#allocation8_spill] sm:$0xff] }
 0x5a6   :  { %v1423_v41 = vpop.f32.mrf.mxu2  ;;  %v1436_v42 = vpop.f32.mrf.mxu3 }
 0x5a7   :  { %v1437_v52 = vadd.f32 %v1436_v42, %v3073_v49  ;;  %v1399_v53 = vpop.f32.mrf.mxu0  ;;  %v1412_v55 = vpop.f32.mrf.mxu1  ;;  %v1424_v34 = vadd.f32 %v1423_v41, %v3074_v25 }
 0x5a8   :  { %v2118_v53 = vld [vmem:[%s3018_s4 + $0x8] sm:$0xff] }
 0x5a9   :  { %v2012_v61 = vmul.f32 -1.442695, %v1437_v52  ;;  %v2119_v52 = vld [vmem:[%s3018_s4 + $0x10] sm:$0xff] }
 0x5aa   :  { %v2254_v62 = vpop.eup %2253 }
 0x5ab   :  { %v2256_v63 = vpop.eup %2255  ;;  %v1443_v4 = vadd.f32 1.0, %v2254_v62  ;;  %2257 = vpow2.f32 %v2012_v61  ;;  %v3077_v62 = vld [vmem:[#allocation34_spill] sm:$0xff] }
 0x5ac   :  { %v1462_v6 = vadd.f32 1.0, %v2256_v63 }
 0x5ad   :  { %2259 = vrcp.f32 %v1443_v4  ;;  %v1455_v0 = vand.u32 2147483648, %v1443_v4  ;;  %v1453_v45 = vand.u32 2147483647, %v1443_v4  ;;  %vm1449_vm9 = vweird.f32 %v1443_v4 }
 0x5ae   :  { %2261 = vrcp.f32 %v1462_v6  ;;  %v1425_v14 = vpop.f32.mrf.mxu2  ;;  %v1438_v15 = vpop.f32.mrf.mxu3  ;;  %v1474_v5 = vand.u32 2147483648, %v1462_v6  ;;  %v1472_v59 = vand.u32 2147483647, %v1462_v6  ;;  %vm1468_vm10 = vweird.f32 %v1462_v6 }
 0x5af   :  { %v1456_v33 = vor.u32 1.1754944e-38, %v1455_v0  ;;  %vm1454_vm13 = vcmp.eq.f32.partialorder %v1453_v45, 8.507059e+37  ;;  %v2117_v14 = vld [vmem:[%s3018_s4] sm:$0xff] }
 0x5b0   :  { %v1475_v9 = vor.u32 1.1754944e-38, %v1474_v5  ;;  %vm1473_vm14 = vcmp.eq.f32.partialorder %v1472_v59, 8.507059e+37  ;;  %v3078_v5 = vld [vmem:[#allocation33_spill] sm:$0xff]  ;;  %v2130_v59 = vld [vmem:[%s3020_s6 + $0x28] sm:$0xff] }
 0x5b1   :  { %v2258_v16 = vpop.eup %2257 }
 0x5b2   :  { %v1482_v19 = vadd.f32 1.0, %v2258_v16 }
 0x5b3   :  { %v2260_v24 = vpop.eup %2259 }
 0x5b4   :  { %v2262_v35 = vpop.eup %2261  ;;  %v1445_v44 = vmul.f32 %v2260_v24, %v1443_v4  ;;  %2263 = vrcp.f32 %v1482_v19  ;;  %vm1450_vm7 = vweird.f32 %v2260_v24  ;;  %v1494_v26 = vand.u32 2147483648, %v1482_v19 }
 0x5b5   :  { %v1464_v48 = vmul.f32 %v2262_v35, %v1462_v6  ;;  %2265 = vtanh.f32 %v1424_v34  ;;  %vm1469_vm8 = vweird.f32 %v2262_v35  ;;  %vm1451_vm11 = vmor %vm1449_vm9, %vm1450_vm7  ;;  %vm1488_vm0 = vweird.f32 %v1482_v19 }
 0x5b6   :  { %v1446_v54 = vsub.f32 1.0, %v1445_v44  ;;  %vm1470_vm12 = vmor %vm1468_vm10, %vm1469_vm8  ;;  %v1492_v2 = vand.u32 2147483647, %v1482_v19  ;;  %v1495_v46 = vor.u32 1.1754944e-38, %v1494_v26  ;;  %v2132_v44 = vld [vmem:[%s3020_s6 + $0x38] sm:$0xff] }
 0x5b7   :  { %v1465_v56 = vsub.f32 1.0, %v1464_v48  ;;  %1778 = vmatpush.bf16.msra.mxu1 %v2132_v44  ;;  %v2131_v48 = vld [vmem:[%s3020_s6 + $0x30] sm:$0xff] }
 0x5b8   :  { %v1447_v7 = vmul.f32 %v2260_v24, %v1446_v54  ;;  %vm1493_vm2 = vcmp.eq.f32.partialorder %v1492_v2, 8.507059e+37  ;;  %v2128_v2 = vld [vmem:[%s3020_s6 + $0x18] sm:$0xff] }
 0x5b9   :  { %v1466_v47 = vmul.f32 %v2262_v35, %v1465_v56 }
 0x5ba   :  { %v2264_v58 = vpop.eup %2263  ;;  %v1448_v50 = vadd.f32 %v2260_v24, %v1447_v7 }
 0x5bb   :  { %v1467_v3 = vadd.f32 %v2262_v35, %v1466_v47  ;;  %v1484_v37 = vmul.f32 %v2264_v58, %v1482_v19  ;;  %v2266_v60 = vpop.eup %2265  ;;  %vm1489_vm15 = vweird.f32 %v2264_v58  ;;  %1779 = vmatpush.bf16.msra.mxu1 %v2131_v48 }
 0x5bc   :  { %v1452_v43 = vsel %vm1451_vm11, %v2260_v24, %v1448_v50  ;;  %vm1490_vm1 = vmor %vm1488_vm0, %vm1489_vm15 }
 0x5bd   :  { %v1457_v8 = vsel %vm1454_vm13, %v1456_v33, %v1452_v43  ;;  %v1471_v30 = vsel %vm1470_vm12, %v2262_v35, %v1467_v3  ;;  %v1485_v23 = vsub.f32 1.0, %v1484_v37 }
 0x5be   :  { %v1476_v10 = vsel %vm1473_vm14, %v1475_v9, %v1471_v30  ;;  %v1499_v57 = vmul.f32 %v2266_v60, %v1457_v8  ;;  %v2129_v60 = vld [vmem:[%s3020_s6 + $0x20] sm:$0xff] }
 0x5bf   :  { %v1498_v11 = vmul.f32 %v1476_v10, %v2944_v21  ;;  %v1486_v18 = vmul.f32 %v2264_v58, %v1485_v23  ;;  %v2124_v21 = vld [vmem:[%s3018_s4 + $0x38] sm:$0xff]  ;;  %1780 = vmatpush.bf16.msra.mxu1 %v2130_v59 }
 0x5c0   :  { %1695 = vmatpush.bf16.msra.mxu0 %v2124_v21 }
 0x5c1   :  { %v2952_v17 = vadd.f32 %v1499_v57, %v1498_v11  ;;  %v1487_v1 = vadd.f32 %v2264_v58, %v1486_v18 }
 0x5c3   :  { %2267 = vtanh.f32 %v2952_v17  ;;  %v1491_v22 = vsel %vm1490_vm1, %v2264_v58, %v1487_v1  ;;  %1781 = vmatpush.bf16.msra.mxu1 %v2129_v60 }
 0x5c4   :  { %v1496_v51 = vsel %vm1493_vm2, %v1495_v46, %v1491_v22  ;;  %1696 = vmatpush.bf16.msra.mxu0 %v2123_v12  ;;  %vm1810_vm2 = vcmask 7168  }
 0x5c7   :  { %1782 = vmatpush.bf16.msra.mxu1 %v2128_v2 }
 0x5c8   :  { %1697 = vmatpush.bf16.msra.mxu0 %v2122_v20  ;;  %v2127_v20 = vld [vmem:[%s3020_s6 + $0x10] sm:$0xff] }
 0x5c9   :  { %v2268_v29 = vpop.eup %2267 }
 0x5ca   :  { %v1502_v39 = vmul.f32 %v2268_v29, %v1496_v51 }
 0x5cb   :  { %1783 = vmatpush.bf16.msra.mxu1 %v2127_v20 }
 0x5cc   :  { %v1503_v38 = vpack.c.bf16 %v1502_v39, %v1502_v39  ;;  %1698 = vmatpush.bf16.msra.mxu0 %v2121_v13 }
 0x5ce   :  { %1519 = vmatmul.bf16.vlgmr.msrb.gmra.mxu0 %v1503_v38  ;;  %1532 = vmatmul.bf16.vlgmr.msrb.gmra.mxu1 %v1503_v38 }
 0x5cf   :  { %1545 = vmatmul.bf16.vlgmr.msra.gmra.mxu2 %v1503_v38  ;;  %1558 = vmatmul.bf16.vlgmr.msra.gmra.mxu3 %v1503_v38 }
 0x5d0   :  { %1699 = vmatpush.bf16.msra.mxu0 %v2120_v27 }
 0x5d4   :  { %1700 = vmatpush.bf16.msra.mxu0 %v2119_v52  ;;  %v2125_v52 = vld [vmem:[%s3020_s6] sm:$0xff] }
 0x5d8   :  { %1701 = vmatpush.bf16.msra.mxu0 %v2118_v53  ;;  %v2139_v53 = vld [vmem:[%s3019_s5] ss:$0 sm:$0xff] }
 0x5dc   :  { %1702 = vmatpush.bf16.msra.mxu0 %v2117_v14 }
 0x64b   :  { %v1520_v28 = vpop.f32.mrf.mxu0  ;;  %v1533_v31 = vpop.f32.mrf.mxu1 }
 0x64c   :  { %v1521_v36 = vadd.f32 %v1520_v28, %v3075_v32  ;;  %v1534_v41 = vadd.f32 %v1533_v31, %v3076_v40 }
 0x64e   :  { %v2013_v42 = vmul.f32 -1.442695, %v1521_v36  ;;  %v2014_v49 = vmul.f32 -1.442695, %v1534_v41 }
 0x650   :  { %2269 = vpow2.f32 %v2013_v42 }
 0x651   :  { %2271 = vpow2.f32 %v2014_v49  ;;  %v2126_v49 = vld [vmem:[%s3020_s6 + $0x8] sm:$0xff] }
 0x652   :  { %v1546_v55 = vpop.f32.mrf.mxu2  ;;  %v1559_v61 = vpop.f32.mrf.mxu3  ;;  %1784 = vmatpush.bf16.msra.mxu1 %v2126_v49 }
 0x653   :  { %v1560_v63 = vadd.f32 %v1559_v61, %v3077_v62  ;;  %v1522_v4 = vpop.f32.mrf.mxu0  ;;  %v1535_v6 = vpop.f32.mrf.mxu1  ;;  %v1547_v7 = vadd.f32 %v1546_v55, %v3078_v5 }
 0x654   :  { %v2140_v6 = vld [vmem:[#allocation3] ss:$0 sm:$0xff] }
 0x655   :  { %v2015_v15 = vmul.f32 -1.442695, %v1560_v63 }
 0x656   :  { %v2270_v16 = vpop.eup %2269  ;;  %1785 = vmatpush.bf16.msra.mxu1 %v2125_v52 }
 0x657   :  { %v2272_v19 = vpop.eup %2271  ;;  %v1566_v24 = vadd.f32 1.0, %v2270_v16  ;;  %2273 = vpow2.f32 %v2015_v15 }
 0x658   :  { %v1585_v25 = vadd.f32 1.0, %v2272_v19 }
 0x659   :  { %2275 = vrcp.f32 %v1566_v24  ;;  %v1578_v3 = vand.u32 2147483648, %v1566_v24  ;;  %v1576_v43 = vand.u32 2147483647, %v1566_v24  ;;  %vm1572_vm5 = vweird.f32 %v1566_v24 }
 0x65a   :  { %2277 = vrcp.f32 %v1585_v25  ;;  %v1548_v34 = vpop.f32.mrf.mxu2  ;;  %v1561_v35 = vpop.f32.mrf.mxu3  ;;  %v1597_v37 = vand.u32 2147483648, %v1585_v25  ;;  %v1595_v30 = vand.u32 2147483647, %v1585_v25  ;;  %vm1591_vm6 = vweird.f32 %v1585_v25 }
 0x65b   :  { %v1579_v57 = vor.u32 1.1754944e-38, %v1578_v3  ;;  %vm1577_vm9 = vcmp.eq.f32.partialorder %v1576_v43, 8.507059e+37 }
 0x65c   :  { %v1598_v1 = vor.u32 1.1754944e-38, %v1597_v37  ;;  %vm1596_vm10 = vcmp.eq.f32.partialorder %v1595_v30, 8.507059e+37 }
 0x65d   :  { %v2274_v54 = vpop.eup %2273 }
 0x65e   :  { %v1605_v56 = vadd.f32 1.0, %v2274_v54 }
 0x65f   :  { %v2276_v0 = vpop.eup %2275 }
 0x660   :  { %v2278_v45 = vpop.eup %2277  ;;  %v1568_v47 = vmul.f32 %v2276_v0, %v1566_v24  ;;  %2279 = vrcp.f32 %v1605_v56  ;;  %vm1573_vm3 = vweird.f32 %v2276_v0  ;;  %v1617_v28 = vand.u32 2147483648, %v1605_v56 }
 0x661   :  { %v1587_v58 = vmul.f32 %v2278_v45, %v1585_v25  ;;  %2281 = vtanh.f32 %v1547_v7  ;;  %vm1592_vm4 = vweird.f32 %v2278_v45  ;;  %vm1574_vm7 = vmor %vm1572_vm5, %vm1573_vm3  ;;  %vm1611_vm12 = vweird.f32 %v1605_v56 }
 0x662   :  { %v1569_v50 = vsub.f32 1.0, %v1568_v47  ;;  %vm1593_vm8 = vmor %vm1591_vm6, %vm1592_vm4  ;;  %v1615_v31 = vand.u32 2147483647, %v1605_v56  ;;  %v1618_v36 = vor.u32 1.1754944e-38, %v1617_v28 }
 0x663   :  { %v1588_v33 = vsub.f32 1.0, %v1587_v58 }
 0x664   :  { %v1570_v9 = vmul.f32 %v2276_v0, %v1569_v50  ;;  %vm1616_vm14 = vcmp.eq.f32.partialorder %v1615_v31, 8.507059e+37 }
 0x665   :  { %v1589_v8 = vmul.f32 %v2278_v45, %v1588_v33 }
 0x666   :  { %v2280_v23 = vpop.eup %2279  ;;  %v1571_v10 = vadd.f32 %v2276_v0, %v1570_v9 }
 0x667   :  { %v1590_v11 = vadd.f32 %v2278_v45, %v1589_v8  ;;  %v1607_v18 = vmul.f32 %v2280_v23, %v1605_v56  ;;  %v2282_v22 = vpop.eup %2281  ;;  %vm1612_vm11 = vweird.f32 %v2280_v23 }
 0x668   :  { %v1575_v26 = vsel %vm1574_vm7, %v2276_v0, %v1571_v10  ;;  %vm1613_vm13 = vmor %vm1611_vm12, %vm1612_vm11 }
 0x669   :  { %v1580_v46 = vsel %vm1577_vm9, %v1579_v57, %v1575_v26  ;;  %v1594_v29 = vsel %vm1593_vm8, %v2278_v45, %v1590_v11  ;;  %v1608_v51 = vsub.f32 1.0, %v1607_v18 }
 0x66a   :  { %v1599_v39 = vsel %vm1596_vm10, %v1598_v1, %v1594_v29  ;;  %v1622_v38 = vmul.f32 %v2282_v22, %v1580_v46 }
 0x66b   :  { %v1621_v21 = vmul.f32 %v1599_v39, %v2952_v17  ;;  %v1609_v12 = vmul.f32 %v2280_v23, %v1608_v51 }
 0x66d   :  { %v1623_v13 = vadd.f32 %v1622_v38, %v1621_v21  ;;  %v1610_v27 = vadd.f32 %v2280_v23, %v1609_v12 }
 0x66f   :  { %2283 = vtanh.f32 %v1623_v13  ;;  %v1614_v32 = vsel %vm1613_vm13, %v2280_v23, %v1610_v27 }
 0x670   :  { %v1619_v17 = vsel %vm1616_vm14, %v1618_v36, %v1614_v32 }
 0x675   :  { %v2284_v40 = vpop.eup %2283 }
 0x676   :  { %v1625_v41 = vmul.f32 %v2284_v40, %v1619_v17 }
 0x678   :  { %v1626_v42 = vpack.c.bf16 %v1625_v41, %v1625_v41 }
 0x67a   :  { %1703 = vmatmul.bf16.vlgmr.msra.gmra.mxu0 %v1626_v42 }
 0x6f7   :  { %v1704_v55 = vpop.f32.mrf.mxu0 }
 0x6f8   :  { %v1705_v61 = vadd.f32 %v2139_v53, %v1704_v55 }
 0x6fa   :  { %v1708_v62 = vmax.f32 %v1705_v61, 0.0 }
 0x6fc   :  { %v1709_v63 = vpack.c.bf16 %v1708_v62, %v1708_v62 }
 0x6fe   :  { %1786 = vmatmul.bf16.vlgmr.msra.gmra.mxu1 %v1709_v63 }
 0x6ff   :  { %v1706_v4 = vpop.f32.mrf.mxu0 }
 0x77b   :  { %v1787_v14 = vpop.f32.mrf.mxu1 }
 0x77c   :  { %v1788_v15 = vadd.f32 %v2140_v6, %v1787_v14 }
 0x77e   :  { %v2080_v16 = vmul.f32 -1.442695, %v1788_v15 }
 0x780   :  { %2285 = vpow2.f32 %v2080_v16 }
 0x783   :  { %v1789_v19 = vpop.f32.mrf.mxu1 }
 0x786   :  { %v2286_v24 = vpop.eup %2285 }
 0x787   :  { %v1794_v25 = vadd.f32 1.0, %v2286_v24 }
 0x789   :  { %2287 = vrcp.f32 %v1794_v25  ;;  %v1806_v48 = vand.u32 2147483648, %v1794_v25  ;;  %v1804_v56 = vand.u32 2147483647, %v1794_v25  ;;  %vm1800_vm0 = vweird.f32 %v1794_v25 }
 0x78b   :  { %v1807_v5 = vor.u32 1.1754944e-38, %v1806_v48  ;;  %vm1805_vm3 = vcmp.eq.f32.partialorder %v1804_v56, 8.507059e+37 }
 0x78f   :  { %v2288_v34 = vpop.eup %2287 }
 0x790   :  { %v1796_v35 = vmul.f32 %v2288_v34, %v1794_v25  ;;  %vm1801_vm15 = vweird.f32 %v2288_v34 }
 0x791   :  { %vm1802_vm1 = vmor %vm1800_vm0, %vm1801_vm15 }
 0x792   :  { %v1797_v44 = vsub.f32 1.0, %v1796_v35 }
 0x794   :  { %v1798_v54 = vmul.f32 %v2288_v34, %v1797_v44 }
 0x796   :  { %v1799_v0 = vadd.f32 %v2288_v34, %v1798_v54 }
 0x798   :  { %v1803_v7 = vsel %vm1802_vm1, %v2288_v34, %v1799_v0 }
 0x799   :  { %v1808_v45 = vsel %vm1805_vm3, %v1807_v5, %v1803_v7 }
 0x79a   :  { %1811 = vst.msk [vmem:[%s3022_s8] sm:$0xff] %vm1810_vm2, %v1808_v45 }
 0x79b   :  { %1816 = vsyncpa [#allocation5], 1 }

</bundles_post_ra>
